<compile_context>
chip_gen: v6e
topology: v6e:2x2x1
jax: 0.10.0
libtpu: 0.0.40
codegen_flags: <defaults>
</compile_context>

<pallas_src>
import functools
import math

import jax
import jax.numpy as jnp
from jax.experimental import pallas as pl
from jax.experimental.pallas import tpu as pltpu


CFG = dict(
    vocab_size=100,
    type_vocab_size=2,
    hidden_size=32,
    intermediate_size=64,
    max_sequence_len=16,
    num_attention_heads=2,
    num_bert_layers=2,
    num_labels=5,
    initializer_range=0.02,
    eps=1e-12,
)

_GELU_C = math.sqrt(2.0 / math.pi)


def _vmem_spec():
    return pl.BlockSpec(memory_space=pltpu.MemorySpace.VMEM)


def _cparams():
    # Tiny model: weights + activations fit easily in VMEM on every TPU gen.
    return pltpu.CompilerParams(vmem_limit_bytes=32 * 1024 * 1024)


# --------------------------------------------------------------------------
# Fused kernel: embedding-LN -> L x (attention + FFN) -> pooler -> task head
# --------------------------------------------------------------------------
def _fused_kernel(x_ref, am_ref,
                  embg_ref, embb_ref,
                  wqkv_ref, bqkv_ref, wo_ref, bo_ref,
                  ln1g_ref, ln1b_ref,
                  w1_ref, b1_ref, w2_ref, b2_ref,
                  ln2g_ref, ln2b_ref,
                  poolw_ref, poolb_ref,
                  *rest,
                  task, num_layers, num_heads, head_dim, hidden, seq_len, eps):
    head_refs = rest[:-1]
    out_ref = rest[-1]

    rows = x_ref.shape[0]
    n_ex = rows // seq_len
    scale = 1.0 / math.sqrt(head_dim)

    def layernorm(v, g, b):
        mean = jnp.mean(v, axis=-1, keepdims=True)
        cen = v - mean
        var = jnp.mean(cen * cen, axis=-1, keepdims=True)
        return cen * jax.lax.rsqrt(var + eps) * g + b

    def gelu(v):
        # tanh-approximate GELU: tanh runs on the EUP (erf is a VPU polynomial).
        return 0.5 * v * (1.0 + jnp.tanh(_GELU_C * (v + 0.044715 * v * v * v)))

    def bf(a):
        return a.astype(jnp.bfloat16)

    def mm(a, w):  # bf16 MXU inputs, f32 accumulation
        return jnp.dot(bf(a), w, preferred_element_type=jnp.float32)

    # Additive key-padding masks built in-kernel from the (n_ex, S) mask.
    addmask = [(1.0 - am_ref[e:e + 1, :]) * (-10000.0) for e in range(n_ex)]

    x = layernorm(x_ref[...], embg_ref[...], embb_ref[...])

    # TODO(synk): dropout is identity (eval mode); not implemented as a kernel.
    for l in range(num_layers):            # static unroll; weights VMEM-resident
        wqkv = wqkv_ref[l]                 # (H, 3H) bf16 fused QKV weight
        wo = wo_ref[l]                     # (H, H)  bf16
        qkv = mm(x, wqkv) + bqkv_ref[l]    # (rows, 3H) f32

        blocks = []
        for e in range(n_ex):              # per-example attention: (S,S) scores
            r0 = e * seq_len
            attn_e = None
            for h in range(num_heads):     # head split via static lane slices
                c0 = h * head_dim
                q = qkv[r0:r0 + seq_len, c0:c0 + head_dim]
                k = qkv[r0:r0 + seq_len, hidden + c0:hidden + c0 + head_dim]
                v = qkv[r0:r0 + seq_len, 2 * hidden + c0:2 * hidden + c0 + head_dim]
                s = jax.lax.dot_general(bf(q), bf(k), (((1,), (1,)), ((), ())),
                                        preferred_element_type=jnp.float32)
                s = s * scale + addmask[e]
                s = s - jnp.max(s, axis=-1, keepdims=True)
                p = jnp.exp(s)
                p = p * pl.reciprocal(jnp.sum(p, axis=-1, keepdims=True), approx=True)
                ctx = mm(p, bf(v))                              # (S, DH)
                # Head-merge + output projection fused into per-head partials.
                part = mm(ctx, wo[c0:c0 + head_dim, :])         # (S, H)
                attn_e = part if attn_e is None else attn_e + part
            blocks.append(attn_e)
        attn = jnp.concatenate(blocks, axis=0) + bo_ref[l]      # (rows, H)

        x = layernorm(x + attn, ln1g_ref[l], ln1b_ref[l])
        inter = gelu(mm(x, w1_ref[l]) + b1_ref[l])
        ffn = mm(inter, w2_ref[l]) + b2_ref[l]
        x = layernorm(x + ffn, ln2g_ref[l], ln2b_ref[l])

    # Pooler + task head, computed for every token row (sublane-full M, extra
    # FLOPs are negligible); the wrapper slices rows [::S] = first tokens.
    pooled = jnp.tanh(mm(x, poolw_ref[...]) + poolb_ref[...])   # (rows, H)

    if task == "embed":
        out_ref[...] = pooled
    elif task == "sentiment":
        sw1, sb1, sw2, sb2 = head_refs
        h1 = jnp.maximum(mm(pooled, sw1[...]) + sb1[...], 0.0)
        out_ref[...] = mm(h1, sw2[...]) + sb2[...]
    elif task == "paraphrase_classifier":
        w, b = head_refs
        half = rows // 2
        p1 = pooled[:half, :]
        p2 = pooled[half:, :]
        wv = w[...]
        # concat([p1,p2]) @ W == p1 @ W[:H] + p2 @ W[H:]  (no concat needed)
        out_ref[...] = mm(p1, wv[:hidden, :]) + mm(p2, wv[hidden:, :]) + b[...]
    elif task == "paraphrase_regressor":
        w11, b11, w12, b12, w21, b21, w22, b22 = head_refs
        half = rows // 2
        p1 = pooled[:half, :]
        p2 = pooled[half:, :]

        def mlp(p, wa, ba, wb, bb):
            h = jnp.maximum(mm(p, wa[...]) + ba[...], 0.0)
            return jnp.maximum(mm(h, wb[...]) + bb[...], 0.0)

        e1 = mlp(p1, w11, b11, w12, b12)
        e2 = mlp(p2, w21, b21, w22, b22)
        dot = jnp.sum(e1 * e2, axis=-1, keepdims=True)
        n1 = jnp.sqrt(jnp.sum(e1 * e1, axis=-1, keepdims=True))
        n2 = jnp.sqrt(jnp.sum(e2 * e2, axis=-1, keepdims=True))
        cos = dot / jnp.maximum(n1 * n2, 1e-8)
        out_ref[...] = jnp.clip(cos * 5.0, 0.0, 5.0)            # eval-mode clipping
    else:
        raise ValueError(f"unknown task {task}")


def _run_fused(x, am, params, cfg, task, head_args, out_rows, out_cols):
    H = cfg["hidden_size"]
    NH = cfg["num_attention_heads"]
    kernel = functools.partial(
        _fused_kernel,
        task=task,
        num_layers=cfg["num_bert_layers"],
        num_heads=NH,
        head_dim=H // NH,
        hidden=H,
        seq_len=am.shape[1],
        eps=cfg["eps"],
    )
    args = (
        x, am,
        params["emb_ln_g"], params["emb_ln_b"],
        params["wqkv"], params["bqkv"], params["wo"], params["bo"],
        params["ln1_g"], params["ln1_b"],
        params["w1"], params["b1"], params["w2"], params["b2"],
        params["ln2_g"], params["ln2_b"],
        params["pooler_w"], params["pooler_b"],
    ) + tuple(head_args)
    return pl.pallas_call(
        kernel,
        in_specs=[_vmem_spec()] * len(args),
        out_specs=_vmem_spec(),
        out_shape=jax.ShapeDtypeStruct((out_rows, out_cols), jnp.float32),
        compiler_params=_cparams(),
    )(*args)


# --------------------------------------------------------------------------
# Deterministic parameter construction (bf16 matmul weights, f32 everything
# else; transformer layer weights stacked along L).
# --------------------------------------------------------------------------
def init_params(key, cfg):
    keys = iter(jax.random.split(key, 64))
    std = cfg["initializer_range"]
    H, I, L = cfg["hidden_size"], cfg["intermediate_size"], cfg["num_bert_layers"]

    def nrm(shape, dtype=jnp.bfloat16):
        return (jax.random.normal(next(keys), shape, jnp.float32) * std).astype(dtype)

    return dict(
        word_emb=nrm((cfg["vocab_size"], H), jnp.float32),
        pos_emb=nrm((cfg["max_sequence_len"], H), jnp.float32),
        type_emb=nrm((cfg["type_vocab_size"], H), jnp.float32),
        emb_ln_g=jnp.ones((1, H), jnp.float32),
        emb_ln_b=jnp.zeros((1, H), jnp.float32),
        wqkv=nrm((L, H, 3 * H)),
        bqkv=jnp.zeros((L, 1, 3 * H), jnp.float32),
        wo=nrm((L, H, H)),
        bo=jnp.zeros((L, 1, H), jnp.float32),
        ln1_g=jnp.ones((L, 1, H), jnp.float32),
        ln1_b=jnp.zeros((L, 1, H), jnp.float32),
        w1=nrm((L, H, I)),
        b1=jnp.zeros((L, 1, I), jnp.float32),
        w2=nrm((L, I, H)),
        b2=jnp.zeros((L, 1, H), jnp.float32),
        ln2_g=jnp.ones((L, 1, H), jnp.float32),
        ln2_b=jnp.zeros((L, 1, H), jnp.float32),
        pooler_w=nrm((H, H)),
        pooler_b=jnp.zeros((1, H), jnp.float32),
        # task heads
        sent_w1=nrm((H, H // 2)), sent_b1=jnp.zeros((1, H // 2), jnp.float32),
        sent_w2=nrm((H // 2, cfg["num_labels"])),
        sent_b2=jnp.zeros((1, cfg["num_labels"]), jnp.float32),
        para_w=nrm((2 * H, 2)), para_b=jnp.zeros((1, 2), jnp.float32),
        reg1_w1=nrm((H, H // 2)), reg1_b1=jnp.zeros((1, H // 2), jnp.float32),
        reg1_w2=nrm((H // 2, H // 4)), reg1_b2=jnp.zeros((1, H // 4), jnp.float32),
        reg2_w1=nrm((H, H // 2)), reg2_b1=jnp.zeros((1, H // 2), jnp.float32),
        reg2_w2=nrm((H // 2, H // 4)), reg2_b2=jnp.zeros((1, H // 4), jnp.float32),
    )


# --------------------------------------------------------------------------
# JAX glue: embedding-table gathers (data-dependent) stay outside the kernel.
# --------------------------------------------------------------------------
def _embed_inputs(params, input_ids, attention_mask, cfg):
    B, S = input_ids.shape
    H = cfg["hidden_size"]
    # TODO(synk): data-dependent embedding-table gathers stay in plain JAX glue.
    we = params["word_emb"][input_ids]                 # (B, S, H)
    pe = params["pos_emb"][:S][None, :, :]             # (1, S, H)
    te = params["type_emb"][0][None, None, :]          # token_type_ids = 0
    x = (we + pe + te).reshape(B * S, H).astype(jnp.float32)
    return x, attention_mask.astype(jnp.float32)


# --------------------------------------------------------------------------
# MultitaskBERT forward
# --------------------------------------------------------------------------
def multitask_forward(params, task, input_ids_1, attention_mask_1,
                      input_ids_2=None, attention_mask_2=None, cfg=CFG):
    B, S = input_ids_1.shape
    H = cfg["hidden_size"]

    if task in ("embed", "sentiment"):
        x, am = _embed_inputs(params, input_ids_1, attention_mask_1, cfg)
        if task == "embed":
            out = _run_fused(x, am, params, cfg, "embed", (), B * S, H)
        else:
            head = (params["sent_w1"], params["sent_b1"],
                    params["sent_w2"], params["sent_b2"])
            out = _run_fused(x, am, params, cfg, "sentiment", head,
                             B * S, cfg["num_labels"])
        return out[::S]                     # first-token (pooler) row per example

    if task in ("paraphrase_classifier", "paraphrase_regressor"):
        if input_ids_2 is None or attention_mask_2 is None:
            raise AttributeError
        # Batch the sentence pair through a single 2B-example encoder call.
        ids = jnp.concatenate([input_ids_1, input_ids_2], axis=0)
        ams = jnp.concatenate([attention_mask_1, attention_mask_2], axis=0)
        x, am = _embed_inputs(params, ids, ams, cfg)
        if task == "paraphrase_classifier":
            head = (params["para_w"], params["para_b"])
            out = _run_fused(x, am, params, cfg, "paraphrase_classifier", head,
                             B * S, 2)
            return out[::S]
        head = (params["reg1_w1"], params["reg1_b1"], params["reg1_w2"], params["reg1_b2"],
                params["reg2_w1"], params["reg2_b1"], params["reg2_w2"], params["reg2_b2"])
        out = _run_fused(x, am, params, cfg, "paraphrase_regressor", head, B * S, 1)
        return out[::S].reshape(-1)

    raise AttributeError(f"unknown task {task}")


# --------------------------------------------------------------------------
if __name__ == "__main__":
    key = jax.random.PRNGKey(0)
    k_param, k_ids1, k_ids2 = jax.random.split(key, 3)
    params = init_params(k_param, CFG)

    B, S = 2, 8
    input_ids_1 = jax.random.randint(k_ids1, (B, S), 1, CFG["vocab_size"], dtype=jnp.int32)
    input_ids_2 = jax.random.randint(k_ids2, (B, S), 1, CFG["vocab_size"], dtype=jnp.int32)
    attention_mask_1 = jnp.ones((B, S), jnp.float32)
    attention_mask_2 = jnp.ones((B, S), jnp.float32).at[1, -2:].set(0.0)

    emb = multitask_forward(params, "embed", input_ids_1, attention_mask_1)
    sent = multitask_forward(params, "sentiment", input_ids_1, attention_mask_1)
    para = multitask_forward(params, "paraphrase_classifier",
                             input_ids_1, attention_mask_1, input_ids_2, attention_mask_2)
    sim = multitask_forward(params, "paraphrase_regressor",
                            input_ids_1, attention_mask_1, input_ids_2, attention_mask_2)

    jax.block_until_ready((emb, sent, para, sim))
    assert emb.shape == (B, CFG["hidden_size"])
    assert sent.shape == (B, CFG["num_labels"])
    assert para.shape == (B, 2)
    assert sim.shape == (B,)
    print("KERNEL_OK")
</pallas_src>

<mosaic_0001>
module attributes {stable_mosaic.version = 11 : i64} {
  func.func @_fused_kernel(%arg0: memref<16x32xf32, #tpu.memory_space<vmem>>, %arg1: memref<2x8xf32, #tpu.memory_space<vmem>>, %arg2: memref<1x32xf32, #tpu.memory_space<vmem>>, %arg3: memref<1x32xf32, #tpu.memory_space<vmem>>, %arg4: memref<2x32x96xbf16, #tpu.memory_space<vmem>>, %arg5: memref<2x1x96xf32, #tpu.memory_space<vmem>>, %arg6: memref<2x32x32xbf16, #tpu.memory_space<vmem>>, %arg7: memref<2x1x32xf32, #tpu.memory_space<vmem>>, %arg8: memref<2x1x32xf32, #tpu.memory_space<vmem>>, %arg9: memref<2x1x32xf32, #tpu.memory_space<vmem>>, %arg10: memref<2x32x64xbf16, #tpu.memory_space<vmem>>, %arg11: memref<2x1x64xf32, #tpu.memory_space<vmem>>, %arg12: memref<2x64x32xbf16, #tpu.memory_space<vmem>>, %arg13: memref<2x1x32xf32, #tpu.memory_space<vmem>>, %arg14: memref<2x1x32xf32, #tpu.memory_space<vmem>>, %arg15: memref<2x1x32xf32, #tpu.memory_space<vmem>>, %arg16: memref<32x32xbf16, #tpu.memory_space<vmem>>, %arg17: memref<1x32xf32, #tpu.memory_space<vmem>>, %arg18: memref<16x32xf32, #tpu.memory_space<vmem>>) attributes {dimension_semantics = [], scalar_prefetch = 0 : i64, scratch_operands = 0 : i64, tpu.core_type = #tpu.core_type<tc>} {
    %c0 = arith.constant 0 : index
    %c0_0 = arith.constant 0 : index
    %0 = vector.load %arg1[%c0, %c0_0] : memref<2x8xf32, #tpu.memory_space<vmem>>, vector<1x8xf32>
    %cst = arith.constant 1.000000e+00 : f32
    %1 = vector.broadcast %cst : f32 to vector<1x8xf32>
    %2 = arith.subf %1, %0 : vector<1x8xf32>
    %cst_1 = arith.constant -1.000000e+04 : f32
    %3 = vector.broadcast %cst_1 : f32 to vector<1x8xf32>
    %4 = arith.mulf %2, %3 : vector<1x8xf32>
    %c1 = arith.constant 1 : index
    %c0_2 = arith.constant 0 : index
    %5 = vector.load %arg1[%c1, %c0_2] : memref<2x8xf32, #tpu.memory_space<vmem>>, vector<1x8xf32>
    %cst_3 = arith.constant 1.000000e+00 : f32
    %6 = vector.broadcast %cst_3 : f32 to vector<1x8xf32>
    %7 = arith.subf %6, %5 : vector<1x8xf32>
    %cst_4 = arith.constant -1.000000e+04 : f32
    %8 = vector.broadcast %cst_4 : f32 to vector<1x8xf32>
    %9 = arith.mulf %7, %8 : vector<1x8xf32>
    %c0_5 = arith.constant 0 : index
    %c0_6 = arith.constant 0 : index
    %10 = vector.load %arg0[%c0_5, %c0_6] : memref<16x32xf32, #tpu.memory_space<vmem>>, vector<16x32xf32>
    %c0_7 = arith.constant 0 : index
    %c0_8 = arith.constant 0 : index
    %11 = vector.load %arg2[%c0_7, %c0_8] : memref<1x32xf32, #tpu.memory_space<vmem>>, vector<1x32xf32>
    %c0_9 = arith.constant 0 : index
    %c0_10 = arith.constant 0 : index
    %12 = vector.load %arg3[%c0_9, %c0_10] : memref<1x32xf32, #tpu.memory_space<vmem>>, vector<1x32xf32>
    %cst_11 = arith.constant dense<0.000000e+00> : vector<16xf32>
    %13 = vector.multi_reduction <add>, %10, %cst_11 [1] : vector<16x32xf32> to vector<16xf32>
    %14 = vector.shape_cast %13 : vector<16xf32> to vector<16x1xf32>
    %cst_12 = arith.constant 3.200000e+01 : f32
    %15 = vector.broadcast %cst_12 : f32 to vector<16x1xf32>
    %16 = arith.divf %14, %15 : vector<16x1xf32>
    %17 = vector.broadcast %16 : vector<16x1xf32> to vector<16x32xf32>
    %18 = arith.subf %10, %17 : vector<16x32xf32>
    %19 = arith.mulf %18, %18 : vector<16x32xf32>
    %cst_13 = arith.constant dense<0.000000e+00> : vector<16xf32>
    %20 = vector.multi_reduction <add>, %19, %cst_13 [1] : vector<16x32xf32> to vector<16xf32>
    %21 = vector.shape_cast %20 : vector<16xf32> to vector<16x1xf32>
    %cst_14 = arith.constant 3.200000e+01 : f32
    %22 = vector.broadcast %cst_14 : f32 to vector<16x1xf32>
    %23 = arith.divf %21, %22 : vector<16x1xf32>
    %cst_15 = arith.constant 9.99999996E-13 : f32
    %24 = vector.broadcast %cst_15 : f32 to vector<16x1xf32>
    %25 = arith.addf %23, %24 : vector<16x1xf32>
    %26 = math.rsqrt %25 : vector<16x1xf32>
    %27 = vector.broadcast %26 : vector<16x1xf32> to vector<16x32xf32>
    %28 = arith.mulf %18, %27 : vector<16x32xf32>
    %29 = vector.broadcast %11 : vector<1x32xf32> to vector<16x32xf32>
    %30 = arith.mulf %28, %29 : vector<16x32xf32>
    %31 = vector.broadcast %12 : vector<1x32xf32> to vector<16x32xf32>
    %32 = arith.addf %30, %31 : vector<16x32xf32>
    %c0_16 = arith.constant 0 : index
    %c0_17 = arith.constant 0 : index
    %c0_18 = arith.constant 0 : index
    %33 = vector.load %arg4[%c0_16, %c0_17, %c0_18] : memref<2x32x96xbf16, #tpu.memory_space<vmem>>, vector<1x32x96xbf16>
    %34 = vector.shape_cast %33 : vector<1x32x96xbf16> to vector<32x96xbf16>
    %c0_19 = arith.constant 0 : index
    %c0_20 = arith.constant 0 : index
    %c0_21 = arith.constant 0 : index
    %35 = vector.load %arg6[%c0_19, %c0_20, %c0_21] : memref<2x32x32xbf16, #tpu.memory_space<vmem>>, vector<1x32x32xbf16>
    %36 = vector.shape_cast %35 : vector<1x32x32xbf16> to vector<32x32xbf16>
    %37 = arith.truncf %32 : vector<16x32xf32> to vector<16x32xbf16>
    %cst_22 = arith.constant dense<0.000000e+00> : vector<16x96xf32>
    %38 = tpu.matmul %37, %34, %cst_22 {dimension_numbers = #tpu.dot_dimension_numbers<[1], [0], [0], [1], [0, 0, 1, 1], [], []>} : vector<16x32xbf16>, vector<32x96xbf16>, vector<16x96xf32> -> vector<16x96xf32>
    %c0_23 = arith.constant 0 : index
    %c0_24 = arith.constant 0 : index
    %c0_25 = arith.constant 0 : index
    %39 = vector.load %arg5[%c0_23, %c0_24, %c0_25] : memref<2x1x96xf32, #tpu.memory_space<vmem>>, vector<1x1x96xf32>
    %40 = vector.shape_cast %39 : vector<1x1x96xf32> to vector<1x96xf32>
    %41 = vector.broadcast %40 : vector<1x96xf32> to vector<16x96xf32>
    %42 = arith.addf %38, %41 : vector<16x96xf32>
    %43 = vector.extract_strided_slice %42 {offsets = [0, 0], sizes = [8, 16], strides = [1, 1]} : vector<16x96xf32> to vector<8x16xf32>
    %44 = vector.extract_strided_slice %42 {offsets = [0, 32], sizes = [8, 16], strides = [1, 1]} : vector<16x96xf32> to vector<8x16xf32>
    %45 = vector.extract_strided_slice %42 {offsets = [0, 64], sizes = [8, 16], strides = [1, 1]} : vector<16x96xf32> to vector<8x16xf32>
    %46 = arith.truncf %43 : vector<8x16xf32> to vector<8x16xbf16>
    %47 = arith.truncf %44 : vector<8x16xf32> to vector<8x16xbf16>
    %cst_26 = arith.constant dense<0.000000e+00> : vector<8x8xf32>
    %48 = tpu.matmul %46, %47, %cst_26 {dimension_numbers = #tpu.dot_dimension_numbers<[1], [1], [0], [0], [0, 0, 1, 0], [], []>} : vector<8x16xbf16>, vector<8x16xbf16>, vector<8x8xf32> -> vector<8x8xf32>
    %cst_27 = arith.constant 2.500000e-01 : f32
    %49 = vector.broadcast %cst_27 : f32 to vector<8x8xf32>
    %50 = arith.mulf %48, %49 : vector<8x8xf32>
    %51 = vector.broadcast %4 : vector<1x8xf32> to vector<8x8xf32>
    %52 = arith.addf %50, %51 : vector<8x8xf32>
    %cst_28 = arith.constant dense<0xFF800000> : vector<8xf32>
    %53 = vector.multi_reduction <maximumf>, %52, %cst_28 [1] : vector<8x8xf32> to vector<8xf32>
    %54 = vector.shape_cast %53 : vector<8xf32> to vector<8x1xf32>
    %55 = vector.broadcast %54 : vector<8x1xf32> to vector<8x8xf32>
    %56 = arith.subf %52, %55 : vector<8x8xf32>
    %57 = math.exp %56 : vector<8x8xf32>
    %cst_29 = arith.constant dense<0.000000e+00> : vector<8xf32>
    %58 = vector.multi_reduction <add>, %57, %cst_29 [1] : vector<8x8xf32> to vector<8xf32>
    %59 = vector.shape_cast %58 : vector<8xf32> to vector<8x1xf32>
    %60 = tpu.reciprocal %59 {approx = true} : vector<8x1xf32> -> vector<8x1xf32>
    %61 = vector.broadcast %60 : vector<8x1xf32> to vector<8x8xf32>
    %62 = arith.mulf %57, %61 : vector<8x8xf32>
    %63 = arith.truncf %45 : vector<8x16xf32> to vector<8x16xbf16>
    %64 = arith.truncf %62 : vector<8x8xf32> to vector<8x8xbf16>
    %cst_30 = arith.constant dense<0.000000e+00> : vector<8x16xf32>
    %65 = tpu.matmul %64, %63, %cst_30 {dimension_numbers = #tpu.dot_dimension_numbers<[1], [0], [0], [1], [0, 0, 1, 1], [], []>} : vector<8x8xbf16>, vector<8x16xbf16>, vector<8x16xf32> -> vector<8x16xf32>
    %66 = vector.extract_strided_slice %36 {offsets = [0, 0], sizes = [16, 32], strides = [1, 1]} : vector<32x32xbf16> to vector<16x32xbf16>
    %67 = arith.truncf %65 : vector<8x16xf32> to vector<8x16xbf16>
    %cst_31 = arith.constant dense<0.000000e+00> : vector<8x32xf32>
    %68 = tpu.matmul %67, %66, %cst_31 {dimension_numbers = #tpu.dot_dimension_numbers<[1], [0], [0], [1], [0, 0, 1, 1], [], []>} : vector<8x16xbf16>, vector<16x32xbf16>, vector<8x32xf32> -> vector<8x32xf32>
    %69 = vector.extract_strided_slice %42 {offsets = [0, 16], sizes = [8, 16], strides = [1, 1]} : vector<16x96xf32> to vector<8x16xf32>
    %70 = vector.extract_strided_slice %42 {offsets = [0, 48], sizes = [8, 16], strides = [1, 1]} : vector<16x96xf32> to vector<8x16xf32>
    %71 = vector.extract_strided_slice %42 {offsets = [0, 80], sizes = [8, 16], strides = [1, 1]} : vector<16x96xf32> to vector<8x16xf32>
    %72 = arith.truncf %69 : vector<8x16xf32> to vector<8x16xbf16>
    %73 = arith.truncf %70 : vector<8x16xf32> to vector<8x16xbf16>
    %cst_32 = arith.constant dense<0.000000e+00> : vector<8x8xf32>
    %74 = tpu.matmul %72, %73, %cst_32 {dimension_numbers = #tpu.dot_dimension_numbers<[1], [1], [0], [0], [0, 0, 1, 0], [], []>} : vector<8x16xbf16>, vector<8x16xbf16>, vector<8x8xf32> -> vector<8x8xf32>
    %cst_33 = arith.constant 2.500000e-01 : f32
    %75 = vector.broadcast %cst_33 : f32 to vector<8x8xf32>
    %76 = arith.mulf %74, %75 : vector<8x8xf32>
    %77 = vector.broadcast %4 : vector<1x8xf32> to vector<8x8xf32>
    %78 = arith.addf %76, %77 : vector<8x8xf32>
    %cst_34 = arith.constant dense<0xFF800000> : vector<8xf32>
    %79 = vector.multi_reduction <maximumf>, %78, %cst_34 [1] : vector<8x8xf32> to vector<8xf32>
    %80 = vector.shape_cast %79 : vector<8xf32> to vector<8x1xf32>
    %81 = vector.broadcast %80 : vector<8x1xf32> to vector<8x8xf32>
    %82 = arith.subf %78, %81 : vector<8x8xf32>
    %83 = math.exp %82 : vector<8x8xf32>
    %cst_35 = arith.constant dense<0.000000e+00> : vector<8xf32>
    %84 = vector.multi_reduction <add>, %83, %cst_35 [1] : vector<8x8xf32> to vector<8xf32>
    %85 = vector.shape_cast %84 : vector<8xf32> to vector<8x1xf32>
    %86 = tpu.reciprocal %85 {approx = true} : vector<8x1xf32> -> vector<8x1xf32>
    %87 = vector.broadcast %86 : vector<8x1xf32> to vector<8x8xf32>
    %88 = arith.mulf %83, %87 : vector<8x8xf32>
    %89 = arith.truncf %71 : vector<8x16xf32> to vector<8x16xbf16>
    %90 = arith.truncf %88 : vector<8x8xf32> to vector<8x8xbf16>
    %cst_36 = arith.constant dense<0.000000e+00> : vector<8x16xf32>
    %91 = tpu.matmul %90, %89, %cst_36 {dimension_numbers = #tpu.dot_dimension_numbers<[1], [0], [0], [1], [0, 0, 1, 1], [], []>} : vector<8x8xbf16>, vector<8x16xbf16>, vector<8x16xf32> -> vector<8x16xf32>
    %92 = vector.extract_strided_slice %36 {offsets = [16, 0], sizes = [16, 32], strides = [1, 1]} : vector<32x32xbf16> to vector<16x32xbf16>
    %93 = arith.truncf %91 : vector<8x16xf32> to vector<8x16xbf16>
    %cst_37 = arith.constant dense<0.000000e+00> : vector<8x32xf32>
    %94 = tpu.matmul %93, %92, %cst_37 {dimension_numbers = #tpu.dot_dimension_numbers<[1], [0], [0], [1], [0, 0, 1, 1], [], []>} : vector<8x16xbf16>, vector<16x32xbf16>, vector<8x32xf32> -> vector<8x32xf32>
    %95 = arith.addf %68, %94 : vector<8x32xf32>
    %96 = vector.extract_strided_slice %42 {offsets = [8, 0], sizes = [8, 16], strides = [1, 1]} : vector<16x96xf32> to vector<8x16xf32>
    %97 = vector.extract_strided_slice %42 {offsets = [8, 32], sizes = [8, 16], strides = [1, 1]} : vector<16x96xf32> to vector<8x16xf32>
    %98 = vector.extract_strided_slice %42 {offsets = [8, 64], sizes = [8, 16], strides = [1, 1]} : vector<16x96xf32> to vector<8x16xf32>
    %99 = arith.truncf %96 : vector<8x16xf32> to vector<8x16xbf16>
    %100 = arith.truncf %97 : vector<8x16xf32> to vector<8x16xbf16>
    %cst_38 = arith.constant dense<0.000000e+00> : vector<8x8xf32>
    %101 = tpu.matmul %99, %100, %cst_38 {dimension_numbers = #tpu.dot_dimension_numbers<[1], [1], [0], [0], [0, 0, 1, 0], [], []>} : vector<8x16xbf16>, vector<8x16xbf16>, vector<8x8xf32> -> vector<8x8xf32>
    %cst_39 = arith.constant 2.500000e-01 : f32
    %102 = vector.broadcast %cst_39 : f32 to vector<8x8xf32>
    %103 = arith.mulf %101, %102 : vector<8x8xf32>
    %104 = vector.broadcast %9 : vector<1x8xf32> to vector<8x8xf32>
    %105 = arith.addf %103, %104 : vector<8x8xf32>
    %cst_40 = arith.constant dense<0xFF800000> : vector<8xf32>
    %106 = vector.multi_reduction <maximumf>, %105, %cst_40 [1] : vector<8x8xf32> to vector<8xf32>
    %107 = vector.shape_cast %106 : vector<8xf32> to vector<8x1xf32>
    %108 = vector.broadcast %107 : vector<8x1xf32> to vector<8x8xf32>
    %109 = arith.subf %105, %108 : vector<8x8xf32>
    %110 = math.exp %109 : vector<8x8xf32>
    %cst_41 = arith.constant dense<0.000000e+00> : vector<8xf32>
    %111 = vector.multi_reduction <add>, %110, %cst_41 [1] : vector<8x8xf32> to vector<8xf32>
    %112 = vector.shape_cast %111 : vector<8xf32> to vector<8x1xf32>
    %113 = tpu.reciprocal %112 {approx = true} : vector<8x1xf32> -> vector<8x1xf32>
    %114 = vector.broadcast %113 : vector<8x1xf32> to vector<8x8xf32>
    %115 = arith.mulf %110, %114 : vector<8x8xf32>
    %116 = arith.truncf %98 : vector<8x16xf32> to vector<8x16xbf16>
    %117 = arith.truncf %115 : vector<8x8xf32> to vector<8x8xbf16>
    %cst_42 = arith.constant dense<0.000000e+00> : vector<8x16xf32>
    %118 = tpu.matmul %117, %116, %cst_42 {dimension_numbers = #tpu.dot_dimension_numbers<[1], [0], [0], [1], [0, 0, 1, 1], [], []>} : vector<8x8xbf16>, vector<8x16xbf16>, vector<8x16xf32> -> vector<8x16xf32>
    %119 = vector.extract_strided_slice %36 {offsets = [0, 0], sizes = [16, 32], strides = [1, 1]} : vector<32x32xbf16> to vector<16x32xbf16>
    %120 = arith.truncf %118 : vector<8x16xf32> to vector<8x16xbf16>
    %cst_43 = arith.constant dense<0.000000e+00> : vector<8x32xf32>
    %121 = tpu.matmul %120, %119, %cst_43 {dimension_numbers = #tpu.dot_dimension_numbers<[1], [0], [0], [1], [0, 0, 1, 1], [], []>} : vector<8x16xbf16>, vector<16x32xbf16>, vector<8x32xf32> -> vector<8x32xf32>
    %122 = vector.extract_strided_slice %42 {offsets = [8, 16], sizes = [8, 16], strides = [1, 1]} : vector<16x96xf32> to vector<8x16xf32>
    %123 = vector.extract_strided_slice %42 {offsets = [8, 48], sizes = [8, 16], strides = [1, 1]} : vector<16x96xf32> to vector<8x16xf32>
    %124 = vector.extract_strided_slice %42 {offsets = [8, 80], sizes = [8, 16], strides = [1, 1]} : vector<16x96xf32> to vector<8x16xf32>
    %125 = arith.truncf %122 : vector<8x16xf32> to vector<8x16xbf16>
    %126 = arith.truncf %123 : vector<8x16xf32> to vector<8x16xbf16>
    %cst_44 = arith.constant dense<0.000000e+00> : vector<8x8xf32>
    %127 = tpu.matmul %125, %126, %cst_44 {dimension_numbers = #tpu.dot_dimension_numbers<[1], [1], [0], [0], [0, 0, 1, 0], [], []>} : vector<8x16xbf16>, vector<8x16xbf16>, vector<8x8xf32> -> vector<8x8xf32>
    %cst_45 = arith.constant 2.500000e-01 : f32
    %128 = vector.broadcast %cst_45 : f32 to vector<8x8xf32>
    %129 = arith.mulf %127, %128 : vector<8x8xf32>
    %130 = vector.broadcast %9 : vector<1x8xf32> to vector<8x8xf32>
    %131 = arith.addf %129, %130 : vector<8x8xf32>
    %cst_46 = arith.constant dense<0xFF800000> : vector<8xf32>
    %132 = vector.multi_reduction <maximumf>, %131, %cst_46 [1] : vector<8x8xf32> to vector<8xf32>
    %133 = vector.shape_cast %132 : vector<8xf32> to vector<8x1xf32>
    %134 = vector.broadcast %133 : vector<8x1xf32> to vector<8x8xf32>
    %135 = arith.subf %131, %134 : vector<8x8xf32>
    %136 = math.exp %135 : vector<8x8xf32>
    %cst_47 = arith.constant dense<0.000000e+00> : vector<8xf32>
    %137 = vector.multi_reduction <add>, %136, %cst_47 [1] : vector<8x8xf32> to vector<8xf32>
    %138 = vector.shape_cast %137 : vector<8xf32> to vector<8x1xf32>
    %139 = tpu.reciprocal %138 {approx = true} : vector<8x1xf32> -> vector<8x1xf32>
    %140 = vector.broadcast %139 : vector<8x1xf32> to vector<8x8xf32>
    %141 = arith.mulf %136, %140 : vector<8x8xf32>
    %142 = arith.truncf %124 : vector<8x16xf32> to vector<8x16xbf16>
    %143 = arith.truncf %141 : vector<8x8xf32> to vector<8x8xbf16>
    %cst_48 = arith.constant dense<0.000000e+00> : vector<8x16xf32>
    %144 = tpu.matmul %143, %142, %cst_48 {dimension_numbers = #tpu.dot_dimension_numbers<[1], [0], [0], [1], [0, 0, 1, 1], [], []>} : vector<8x8xbf16>, vector<8x16xbf16>, vector<8x16xf32> -> vector<8x16xf32>
    %145 = vector.extract_strided_slice %36 {offsets = [16, 0], sizes = [16, 32], strides = [1, 1]} : vector<32x32xbf16> to vector<16x32xbf16>
    %146 = arith.truncf %144 : vector<8x16xf32> to vector<8x16xbf16>
    %cst_49 = arith.constant dense<0.000000e+00> : vector<8x32xf32>
    %147 = tpu.matmul %146, %145, %cst_49 {dimension_numbers = #tpu.dot_dimension_numbers<[1], [0], [0], [1], [0, 0, 1, 1], [], []>} : vector<8x16xbf16>, vector<16x32xbf16>, vector<8x32xf32> -> vector<8x32xf32>
    %148 = arith.addf %121, %147 : vector<8x32xf32>
    %149 = tpu.concatenate %95, %148 in 0 : vector<8x32xf32>, vector<8x32xf32> -> vector<16x32xf32>
    %c0_50 = arith.constant 0 : index
    %c0_51 = arith.constant 0 : index
    %c0_52 = arith.constant 0 : index
    %150 = vector.load %arg7[%c0_50, %c0_51, %c0_52] : memref<2x1x32xf32, #tpu.memory_space<vmem>>, vector<1x1x32xf32>
    %151 = vector.shape_cast %150 : vector<1x1x32xf32> to vector<1x32xf32>
    %152 = vector.broadcast %151 : vector<1x32xf32> to vector<16x32xf32>
    %153 = arith.addf %149, %152 : vector<16x32xf32>
    %154 = arith.addf %32, %153 : vector<16x32xf32>
    %c0_53 = arith.constant 0 : index
    %c0_54 = arith.constant 0 : index
    %c0_55 = arith.constant 0 : index
    %155 = vector.load %arg8[%c0_53, %c0_54, %c0_55] : memref<2x1x32xf32, #tpu.memory_space<vmem>>, vector<1x1x32xf32>
    %156 = vector.shape_cast %155 : vector<1x1x32xf32> to vector<1x32xf32>
    %c0_56 = arith.constant 0 : index
    %c0_57 = arith.constant 0 : index
    %c0_58 = arith.constant 0 : index
    %157 = vector.load %arg9[%c0_56, %c0_57, %c0_58] : memref<2x1x32xf32, #tpu.memory_space<vmem>>, vector<1x1x32xf32>
    %158 = vector.shape_cast %157 : vector<1x1x32xf32> to vector<1x32xf32>
    %cst_59 = arith.constant dense<0.000000e+00> : vector<16xf32>
    %159 = vector.multi_reduction <add>, %154, %cst_59 [1] : vector<16x32xf32> to vector<16xf32>
    %160 = vector.shape_cast %159 : vector<16xf32> to vector<16x1xf32>
    %cst_60 = arith.constant 3.200000e+01 : f32
    %161 = vector.broadcast %cst_60 : f32 to vector<16x1xf32>
    %162 = arith.divf %160, %161 : vector<16x1xf32>
    %163 = vector.broadcast %162 : vector<16x1xf32> to vector<16x32xf32>
    %164 = arith.subf %154, %163 : vector<16x32xf32>
    %165 = arith.mulf %164, %164 : vector<16x32xf32>
    %cst_61 = arith.constant dense<0.000000e+00> : vector<16xf32>
    %166 = vector.multi_reduction <add>, %165, %cst_61 [1] : vector<16x32xf32> to vector<16xf32>
    %167 = vector.shape_cast %166 : vector<16xf32> to vector<16x1xf32>
    %cst_62 = arith.constant 3.200000e+01 : f32
    %168 = vector.broadcast %cst_62 : f32 to vector<16x1xf32>
    %169 = arith.divf %167, %168 : vector<16x1xf32>
    %cst_63 = arith.constant 9.99999996E-13 : f32
    %170 = vector.broadcast %cst_63 : f32 to vector<16x1xf32>
    %171 = arith.addf %169, %170 : vector<16x1xf32>
    %172 = math.rsqrt %171 : vector<16x1xf32>
    %173 = vector.broadcast %172 : vector<16x1xf32> to vector<16x32xf32>
    %174 = arith.mulf %164, %173 : vector<16x32xf32>
    %175 = vector.broadcast %156 : vector<1x32xf32> to vector<16x32xf32>
    %176 = arith.mulf %174, %175 : vector<16x32xf32>
    %177 = vector.broadcast %158 : vector<1x32xf32> to vector<16x32xf32>
    %178 = arith.addf %176, %177 : vector<16x32xf32>
    %c0_64 = arith.constant 0 : index
    %c0_65 = arith.constant 0 : index
    %c0_66 = arith.constant 0 : index
    %179 = vector.load %arg10[%c0_64, %c0_65, %c0_66] : memref<2x32x64xbf16, #tpu.memory_space<vmem>>, vector<1x32x64xbf16>
    %180 = vector.shape_cast %179 : vector<1x32x64xbf16> to vector<32x64xbf16>
    %181 = arith.truncf %178 : vector<16x32xf32> to vector<16x32xbf16>
    %cst_67 = arith.constant dense<0.000000e+00> : vector<16x64xf32>
    %182 = tpu.matmul %181, %180, %cst_67 {dimension_numbers = #tpu.dot_dimension_numbers<[1], [0], [0], [1], [0, 0, 1, 1], [], []>} : vector<16x32xbf16>, vector<32x64xbf16>, vector<16x64xf32> -> vector<16x64xf32>
    %c0_68 = arith.constant 0 : index
    %c0_69 = arith.constant 0 : index
    %c0_70 = arith.constant 0 : index
    %183 = vector.load %arg11[%c0_68, %c0_69, %c0_70] : memref<2x1x64xf32, #tpu.memory_space<vmem>>, vector<1x1x64xf32>
    %184 = vector.shape_cast %183 : vector<1x1x64xf32> to vector<1x64xf32>
    %185 = vector.broadcast %184 : vector<1x64xf32> to vector<16x64xf32>
    %186 = arith.addf %182, %185 : vector<16x64xf32>
    %cst_71 = arith.constant 5.000000e-01 : f32
    %187 = vector.broadcast %cst_71 : f32 to vector<16x64xf32>
    %188 = arith.mulf %187, %186 : vector<16x64xf32>
    %cst_72 = arith.constant 4.471500e-02 : f32
    %189 = vector.broadcast %cst_72 : f32 to vector<16x64xf32>
    %190 = arith.mulf %189, %186 : vector<16x64xf32>
    %191 = arith.mulf %190, %186 : vector<16x64xf32>
    %192 = arith.mulf %191, %186 : vector<16x64xf32>
    %193 = arith.addf %186, %192 : vector<16x64xf32>
    %cst_73 = arith.constant 0.797884583 : f32
    %194 = vector.broadcast %cst_73 : f32 to vector<16x64xf32>
    %195 = arith.mulf %194, %193 : vector<16x64xf32>
    %196 = math.tanh %195 : vector<16x64xf32>
    %cst_74 = arith.constant 1.000000e+00 : f32
    %197 = vector.broadcast %cst_74 : f32 to vector<16x64xf32>
    %198 = arith.addf %197, %196 : vector<16x64xf32>
    %199 = arith.mulf %188, %198 : vector<16x64xf32>
    %c0_75 = arith.constant 0 : index
    %c0_76 = arith.constant 0 : index
    %c0_77 = arith.constant 0 : index
    %200 = vector.load %arg12[%c0_75, %c0_76, %c0_77] : memref<2x64x32xbf16, #tpu.memory_space<vmem>>, vector<1x64x32xbf16>
    %201 = vector.shape_cast %200 : vector<1x64x32xbf16> to vector<64x32xbf16>
    %202 = arith.truncf %199 : vector<16x64xf32> to vector<16x64xbf16>
    %cst_78 = arith.constant dense<0.000000e+00> : vector<16x32xf32>
    %203 = tpu.matmul %202, %201, %cst_78 {dimension_numbers = #tpu.dot_dimension_numbers<[1], [0], [0], [1], [0, 0, 1, 1], [], []>} : vector<16x64xbf16>, vector<64x32xbf16>, vector<16x32xf32> -> vector<16x32xf32>
    %c0_79 = arith.constant 0 : index
    %c0_80 = arith.constant 0 : index
    %c0_81 = arith.constant 0 : index
    %204 = vector.load %arg13[%c0_79, %c0_80, %c0_81] : memref<2x1x32xf32, #tpu.memory_space<vmem>>, vector<1x1x32xf32>
    %205 = vector.shape_cast %204 : vector<1x1x32xf32> to vector<1x32xf32>
    %206 = vector.broadcast %205 : vector<1x32xf32> to vector<16x32xf32>
    %207 = arith.addf %203, %206 : vector<16x32xf32>
    %208 = arith.addf %178, %207 : vector<16x32xf32>
    %c0_82 = arith.constant 0 : index
    %c0_83 = arith.constant 0 : index
    %c0_84 = arith.constant 0 : index
    %209 = vector.load %arg14[%c0_82, %c0_83, %c0_84] : memref<2x1x32xf32, #tpu.memory_space<vmem>>, vector<1x1x32xf32>
    %210 = vector.shape_cast %209 : vector<1x1x32xf32> to vector<1x32xf32>
    %c0_85 = arith.constant 0 : index
    %c0_86 = arith.constant 0 : index
    %c0_87 = arith.constant 0 : index
    %211 = vector.load %arg15[%c0_85, %c0_86, %c0_87] : memref<2x1x32xf32, #tpu.memory_space<vmem>>, vector<1x1x32xf32>
    %212 = vector.shape_cast %211 : vector<1x1x32xf32> to vector<1x32xf32>
    %cst_88 = arith.constant dense<0.000000e+00> : vector<16xf32>
    %213 = vector.multi_reduction <add>, %208, %cst_88 [1] : vector<16x32xf32> to vector<16xf32>
    %214 = vector.shape_cast %213 : vector<16xf32> to vector<16x1xf32>
    %cst_89 = arith.constant 3.200000e+01 : f32
    %215 = vector.broadcast %cst_89 : f32 to vector<16x1xf32>
    %216 = arith.divf %214, %215 : vector<16x1xf32>
    %217 = vector.broadcast %216 : vector<16x1xf32> to vector<16x32xf32>
    %218 = arith.subf %208, %217 : vector<16x32xf32>
    %219 = arith.mulf %218, %218 : vector<16x32xf32>
    %cst_90 = arith.constant dense<0.000000e+00> : vector<16xf32>
    %220 = vector.multi_reduction <add>, %219, %cst_90 [1] : vector<16x32xf32> to vector<16xf32>
    %221 = vector.shape_cast %220 : vector<16xf32> to vector<16x1xf32>
    %cst_91 = arith.constant 3.200000e+01 : f32
    %222 = vector.broadcast %cst_91 : f32 to vector<16x1xf32>
    %223 = arith.divf %221, %222 : vector<16x1xf32>
    %cst_92 = arith.constant 9.99999996E-13 : f32
    %224 = vector.broadcast %cst_92 : f32 to vector<16x1xf32>
    %225 = arith.addf %223, %224 : vector<16x1xf32>
    %226 = math.rsqrt %225 : vector<16x1xf32>
    %227 = vector.broadcast %226 : vector<16x1xf32> to vector<16x32xf32>
    %228 = arith.mulf %218, %227 : vector<16x32xf32>
    %229 = vector.broadcast %210 : vector<1x32xf32> to vector<16x32xf32>
    %230 = arith.mulf %228, %229 : vector<16x32xf32>
    %231 = vector.broadcast %212 : vector<1x32xf32> to vector<16x32xf32>
    %232 = arith.addf %230, %231 : vector<16x32xf32>
    %c1_93 = arith.constant 1 : index
    %c0_94 = arith.constant 0 : index
    %c0_95 = arith.constant 0 : index
    %233 = vector.load %arg4[%c1_93, %c0_94, %c0_95] : memref<2x32x96xbf16, #tpu.memory_space<vmem>>, vector<1x32x96xbf16>
    %234 = vector.shape_cast %233 : vector<1x32x96xbf16> to vector<32x96xbf16>
    %c1_96 = arith.constant 1 : index
    %c0_97 = arith.constant 0 : index
    %c0_98 = arith.constant 0 : index
    %235 = vector.load %arg6[%c1_96, %c0_97, %c0_98] : memref<2x32x32xbf16, #tpu.memory_space<vmem>>, vector<1x32x32xbf16>
    %236 = vector.shape_cast %235 : vector<1x32x32xbf16> to vector<32x32xbf16>
    %237 = arith.truncf %232 : vector<16x32xf32> to vector<16x32xbf16>
    %cst_99 = arith.constant dense<0.000000e+00> : vector<16x96xf32>
    %238 = tpu.matmul %237, %234, %cst_99 {dimension_numbers = #tpu.dot_dimension_numbers<[1], [0], [0], [1], [0, 0, 1, 1], [], []>} : vector<16x32xbf16>, vector<32x96xbf16>, vector<16x96xf32> -> vector<16x96xf32>
    %c1_100 = arith.constant 1 : index
    %c0_101 = arith.constant 0 : index
    %c0_102 = arith.constant 0 : index
    %239 = vector.load %arg5[%c1_100, %c0_101, %c0_102] : memref<2x1x96xf32, #tpu.memory_space<vmem>>, vector<1x1x96xf32>
    %240 = vector.shape_cast %239 : vector<1x1x96xf32> to vector<1x96xf32>
    %241 = vector.broadcast %240 : vector<1x96xf32> to vector<16x96xf32>
    %242 = arith.addf %238, %241 : vector<16x96xf32>
    %243 = vector.extract_strided_slice %242 {offsets = [0, 0], sizes = [8, 16], strides = [1, 1]} : vector<16x96xf32> to vector<8x16xf32>
    %244 = vector.extract_strided_slice %242 {offsets = [0, 32], sizes = [8, 16], strides = [1, 1]} : vector<16x96xf32> to vector<8x16xf32>
    %245 = vector.extract_strided_slice %242 {offsets = [0, 64], sizes = [8, 16], strides = [1, 1]} : vector<16x96xf32> to vector<8x16xf32>
    %246 = arith.truncf %243 : vector<8x16xf32> to vector<8x16xbf16>
    %247 = arith.truncf %244 : vector<8x16xf32> to vector<8x16xbf16>
    %cst_103 = arith.constant dense<0.000000e+00> : vector<8x8xf32>
    %248 = tpu.matmul %246, %247, %cst_103 {dimension_numbers = #tpu.dot_dimension_numbers<[1], [1], [0], [0], [0, 0, 1, 0], [], []>} : vector<8x16xbf16>, vector<8x16xbf16>, vector<8x8xf32> -> vector<8x8xf32>
    %cst_104 = arith.constant 2.500000e-01 : f32
    %249 = vector.broadcast %cst_104 : f32 to vector<8x8xf32>
    %250 = arith.mulf %248, %249 : vector<8x8xf32>
    %251 = vector.broadcast %4 : vector<1x8xf32> to vector<8x8xf32>
    %252 = arith.addf %250, %251 : vector<8x8xf32>
    %cst_105 = arith.constant dense<0xFF800000> : vector<8xf32>
    %253 = vector.multi_reduction <maximumf>, %252, %cst_105 [1] : vector<8x8xf32> to vector<8xf32>
    %254 = vector.shape_cast %253 : vector<8xf32> to vector<8x1xf32>
    %255 = vector.broadcast %254 : vector<8x1xf32> to vector<8x8xf32>
    %256 = arith.subf %252, %255 : vector<8x8xf32>
    %257 = math.exp %256 : vector<8x8xf32>
    %cst_106 = arith.constant dense<0.000000e+00> : vector<8xf32>
    %258 = vector.multi_reduction <add>, %257, %cst_106 [1] : vector<8x8xf32> to vector<8xf32>
    %259 = vector.shape_cast %258 : vector<8xf32> to vector<8x1xf32>
    %260 = tpu.reciprocal %259 {approx = true} : vector<8x1xf32> -> vector<8x1xf32>
    %261 = vector.broadcast %260 : vector<8x1xf32> to vector<8x8xf32>
    %262 = arith.mulf %257, %261 : vector<8x8xf32>
    %263 = arith.truncf %245 : vector<8x16xf32> to vector<8x16xbf16>
    %264 = arith.truncf %262 : vector<8x8xf32> to vector<8x8xbf16>
    %cst_107 = arith.constant dense<0.000000e+00> : vector<8x16xf32>
    %265 = tpu.matmul %264, %263, %cst_107 {dimension_numbers = #tpu.dot_dimension_numbers<[1], [0], [0], [1], [0, 0, 1, 1], [], []>} : vector<8x8xbf16>, vector<8x16xbf16>, vector<8x16xf32> -> vector<8x16xf32>
    %266 = vector.extract_strided_slice %236 {offsets = [0, 0], sizes = [16, 32], strides = [1, 1]} : vector<32x32xbf16> to vector<16x32xbf16>
    %267 = arith.truncf %265 : vector<8x16xf32> to vector<8x16xbf16>
    %cst_108 = arith.constant dense<0.000000e+00> : vector<8x32xf32>
    %268 = tpu.matmul %267, %266, %cst_108 {dimension_numbers = #tpu.dot_dimension_numbers<[1], [0], [0], [1], [0, 0, 1, 1], [], []>} : vector<8x16xbf16>, vector<16x32xbf16>, vector<8x32xf32> -> vector<8x32xf32>
    %269 = vector.extract_strided_slice %242 {offsets = [0, 16], sizes = [8, 16], strides = [1, 1]} : vector<16x96xf32> to vector<8x16xf32>
    %270 = vector.extract_strided_slice %242 {offsets = [0, 48], sizes = [8, 16], strides = [1, 1]} : vector<16x96xf32> to vector<8x16xf32>
    %271 = vector.extract_strided_slice %242 {offsets = [0, 80], sizes = [8, 16], strides = [1, 1]} : vector<16x96xf32> to vector<8x16xf32>
    %272 = arith.truncf %269 : vector<8x16xf32> to vector<8x16xbf16>
    %273 = arith.truncf %270 : vector<8x16xf32> to vector<8x16xbf16>
    %cst_109 = arith.constant dense<0.000000e+00> : vector<8x8xf32>
    %274 = tpu.matmul %272, %273, %cst_109 {dimension_numbers = #tpu.dot_dimension_numbers<[1], [1], [0], [0], [0, 0, 1, 0], [], []>} : vector<8x16xbf16>, vector<8x16xbf16>, vector<8x8xf32> -> vector<8x8xf32>
    %cst_110 = arith.constant 2.500000e-01 : f32
    %275 = vector.broadcast %cst_110 : f32 to vector<8x8xf32>
    %276 = arith.mulf %274, %275 : vector<8x8xf32>
    %277 = vector.broadcast %4 : vector<1x8xf32> to vector<8x8xf32>
    %278 = arith.addf %276, %277 : vector<8x8xf32>
    %cst_111 = arith.constant dense<0xFF800000> : vector<8xf32>
    %279 = vector.multi_reduction <maximumf>, %278, %cst_111 [1] : vector<8x8xf32> to vector<8xf32>
    %280 = vector.shape_cast %279 : vector<8xf32> to vector<8x1xf32>
    %281 = vector.broadcast %280 : vector<8x1xf32> to vector<8x8xf32>
    %282 = arith.subf %278, %281 : vector<8x8xf32>
    %283 = math.exp %282 : vector<8x8xf32>
    %cst_112 = arith.constant dense<0.000000e+00> : vector<8xf32>
    %284 = vector.multi_reduction <add>, %283, %cst_112 [1] : vector<8x8xf32> to vector<8xf32>
    %285 = vector.shape_cast %284 : vector<8xf32> to vector<8x1xf32>
    %286 = tpu.reciprocal %285 {approx = true} : vector<8x1xf32> -> vector<8x1xf32>
    %287 = vector.broadcast %286 : vector<8x1xf32> to vector<8x8xf32>
    %288 = arith.mulf %283, %287 : vector<8x8xf32>
    %289 = arith.truncf %271 : vector<8x16xf32> to vector<8x16xbf16>
    %290 = arith.truncf %288 : vector<8x8xf32> to vector<8x8xbf16>
    %cst_113 = arith.constant dense<0.000000e+00> : vector<8x16xf32>
    %291 = tpu.matmul %290, %289, %cst_113 {dimension_numbers = #tpu.dot_dimension_numbers<[1], [0], [0], [1], [0, 0, 1, 1], [], []>} : vector<8x8xbf16>, vector<8x16xbf16>, vector<8x16xf32> -> vector<8x16xf32>
    %292 = vector.extract_strided_slice %236 {offsets = [16, 0], sizes = [16, 32], strides = [1, 1]} : vector<32x32xbf16> to vector<16x32xbf16>
    %293 = arith.truncf %291 : vector<8x16xf32> to vector<8x16xbf16>
    %cst_114 = arith.constant dense<0.000000e+00> : vector<8x32xf32>
    %294 = tpu.matmul %293, %292, %cst_114 {dimension_numbers = #tpu.dot_dimension_numbers<[1], [0], [0], [1], [0, 0, 1, 1], [], []>} : vector<8x16xbf16>, vector<16x32xbf16>, vector<8x32xf32> -> vector<8x32xf32>
    %295 = arith.addf %268, %294 : vector<8x32xf32>
    %296 = vector.extract_strided_slice %242 {offsets = [8, 0], sizes = [8, 16], strides = [1, 1]} : vector<16x96xf32> to vector<8x16xf32>
    %297 = vector.extract_strided_slice %242 {offsets = [8, 32], sizes = [8, 16], strides = [1, 1]} : vector<16x96xf32> to vector<8x16xf32>
    %298 = vector.extract_strided_slice %242 {offsets = [8, 64], sizes = [8, 16], strides = [1, 1]} : vector<16x96xf32> to vector<8x16xf32>
    %299 = arith.truncf %296 : vector<8x16xf32> to vector<8x16xbf16>
    %300 = arith.truncf %297 : vector<8x16xf32> to vector<8x16xbf16>
    %cst_115 = arith.constant dense<0.000000e+00> : vector<8x8xf32>
    %301 = tpu.matmul %299, %300, %cst_115 {dimension_numbers = #tpu.dot_dimension_numbers<[1], [1], [0], [0], [0, 0, 1, 0], [], []>} : vector<8x16xbf16>, vector<8x16xbf16>, vector<8x8xf32> -> vector<8x8xf32>
    %cst_116 = arith.constant 2.500000e-01 : f32
    %302 = vector.broadcast %cst_116 : f32 to vector<8x8xf32>
    %303 = arith.mulf %301, %302 : vector<8x8xf32>
    %304 = vector.broadcast %9 : vector<1x8xf32> to vector<8x8xf32>
    %305 = arith.addf %303, %304 : vector<8x8xf32>
    %cst_117 = arith.constant dense<0xFF800000> : vector<8xf32>
    %306 = vector.multi_reduction <maximumf>, %305, %cst_117 [1] : vector<8x8xf32> to vector<8xf32>
    %307 = vector.shape_cast %306 : vector<8xf32> to vector<8x1xf32>
    %308 = vector.broadcast %307 : vector<8x1xf32> to vector<8x8xf32>
    %309 = arith.subf %305, %308 : vector<8x8xf32>
    %310 = math.exp %309 : vector<8x8xf32>
    %cst_118 = arith.constant dense<0.000000e+00> : vector<8xf32>
    %311 = vector.multi_reduction <add>, %310, %cst_118 [1] : vector<8x8xf32> to vector<8xf32>
    %312 = vector.shape_cast %311 : vector<8xf32> to vector<8x1xf32>
    %313 = tpu.reciprocal %312 {approx = true} : vector<8x1xf32> -> vector<8x1xf32>
    %314 = vector.broadcast %313 : vector<8x1xf32> to vector<8x8xf32>
    %315 = arith.mulf %310, %314 : vector<8x8xf32>
    %316 = arith.truncf %298 : vector<8x16xf32> to vector<8x16xbf16>
    %317 = arith.truncf %315 : vector<8x8xf32> to vector<8x8xbf16>
    %cst_119 = arith.constant dense<0.000000e+00> : vector<8x16xf32>
    %318 = tpu.matmul %317, %316, %cst_119 {dimension_numbers = #tpu.dot_dimension_numbers<[1], [0], [0], [1], [0, 0, 1, 1], [], []>} : vector<8x8xbf16>, vector<8x16xbf16>, vector<8x16xf32> -> vector<8x16xf32>
    %319 = vector.extract_strided_slice %236 {offsets = [0, 0], sizes = [16, 32], strides = [1, 1]} : vector<32x32xbf16> to vector<16x32xbf16>
    %320 = arith.truncf %318 : vector<8x16xf32> to vector<8x16xbf16>
    %cst_120 = arith.constant dense<0.000000e+00> : vector<8x32xf32>
    %321 = tpu.matmul %320, %319, %cst_120 {dimension_numbers = #tpu.dot_dimension_numbers<[1], [0], [0], [1], [0, 0, 1, 1], [], []>} : vector<8x16xbf16>, vector<16x32xbf16>, vector<8x32xf32> -> vector<8x32xf32>
    %322 = vector.extract_strided_slice %242 {offsets = [8, 16], sizes = [8, 16], strides = [1, 1]} : vector<16x96xf32> to vector<8x16xf32>
    %323 = vector.extract_strided_slice %242 {offsets = [8, 48], sizes = [8, 16], strides = [1, 1]} : vector<16x96xf32> to vector<8x16xf32>
    %324 = vector.extract_strided_slice %242 {offsets = [8, 80], sizes = [8, 16], strides = [1, 1]} : vector<16x96xf32> to vector<8x16xf32>
    %325 = arith.truncf %322 : vector<8x16xf32> to vector<8x16xbf16>
    %326 = arith.truncf %323 : vector<8x16xf32> to vector<8x16xbf16>
    %cst_121 = arith.constant dense<0.000000e+00> : vector<8x8xf32>
    %327 = tpu.matmul %325, %326, %cst_121 {dimension_numbers = #tpu.dot_dimension_numbers<[1], [1], [0], [0], [0, 0, 1, 0], [], []>} : vector<8x16xbf16>, vector<8x16xbf16>, vector<8x8xf32> -> vector<8x8xf32>
    %cst_122 = arith.constant 2.500000e-01 : f32
    %328 = vector.broadcast %cst_122 : f32 to vector<8x8xf32>
    %329 = arith.mulf %327, %328 : vector<8x8xf32>
    %330 = vector.broadcast %9 : vector<1x8xf32> to vector<8x8xf32>
    %331 = arith.addf %329, %330 : vector<8x8xf32>
    %cst_123 = arith.constant dense<0xFF800000> : vector<8xf32>
    %332 = vector.multi_reduction <maximumf>, %331, %cst_123 [1] : vector<8x8xf32> to vector<8xf32>
    %333 = vector.shape_cast %332 : vector<8xf32> to vector<8x1xf32>
    %334 = vector.broadcast %333 : vector<8x1xf32> to vector<8x8xf32>
    %335 = arith.subf %331, %334 : vector<8x8xf32>
    %336 = math.exp %335 : vector<8x8xf32>
    %cst_124 = arith.constant dense<0.000000e+00> : vector<8xf32>
    %337 = vector.multi_reduction <add>, %336, %cst_124 [1] : vector<8x8xf32> to vector<8xf32>
    %338 = vector.shape_cast %337 : vector<8xf32> to vector<8x1xf32>
    %339 = tpu.reciprocal %338 {approx = true} : vector<8x1xf32> -> vector<8x1xf32>
    %340 = vector.broadcast %339 : vector<8x1xf32> to vector<8x8xf32>
    %341 = arith.mulf %336, %340 : vector<8x8xf32>
    %342 = arith.truncf %324 : vector<8x16xf32> to vector<8x16xbf16>
    %343 = arith.truncf %341 : vector<8x8xf32> to vector<8x8xbf16>
    %cst_125 = arith.constant dense<0.000000e+00> : vector<8x16xf32>
    %344 = tpu.matmul %343, %342, %cst_125 {dimension_numbers = #tpu.dot_dimension_numbers<[1], [0], [0], [1], [0, 0, 1, 1], [], []>} : vector<8x8xbf16>, vector<8x16xbf16>, vector<8x16xf32> -> vector<8x16xf32>
    %345 = vector.extract_strided_slice %236 {offsets = [16, 0], sizes = [16, 32], strides = [1, 1]} : vector<32x32xbf16> to vector<16x32xbf16>
    %346 = arith.truncf %344 : vector<8x16xf32> to vector<8x16xbf16>
    %cst_126 = arith.constant dense<0.000000e+00> : vector<8x32xf32>
    %347 = tpu.matmul %346, %345, %cst_126 {dimension_numbers = #tpu.dot_dimension_numbers<[1], [0], [0], [1], [0, 0, 1, 1], [], []>} : vector<8x16xbf16>, vector<16x32xbf16>, vector<8x32xf32> -> vector<8x32xf32>
    %348 = arith.addf %321, %347 : vector<8x32xf32>
    %349 = tpu.concatenate %295, %348 in 0 : vector<8x32xf32>, vector<8x32xf32> -> vector<16x32xf32>
    %c1_127 = arith.constant 1 : index
    %c0_128 = arith.constant 0 : index
    %c0_129 = arith.constant 0 : index
    %350 = vector.load %arg7[%c1_127, %c0_128, %c0_129] : memref<2x1x32xf32, #tpu.memory_space<vmem>>, vector<1x1x32xf32>
    %351 = vector.shape_cast %350 : vector<1x1x32xf32> to vector<1x32xf32>
    %352 = vector.broadcast %351 : vector<1x32xf32> to vector<16x32xf32>
    %353 = arith.addf %349, %352 : vector<16x32xf32>
    %354 = arith.addf %232, %353 : vector<16x32xf32>
    %c1_130 = arith.constant 1 : index
    %c0_131 = arith.constant 0 : index
    %c0_132 = arith.constant 0 : index
    %355 = vector.load %arg8[%c1_130, %c0_131, %c0_132] : memref<2x1x32xf32, #tpu.memory_space<vmem>>, vector<1x1x32xf32>
    %356 = vector.shape_cast %355 : vector<1x1x32xf32> to vector<1x32xf32>
    %c1_133 = arith.constant 1 : index
    %c0_134 = arith.constant 0 : index
    %c0_135 = arith.constant 0 : index
    %357 = vector.load %arg9[%c1_133, %c0_134, %c0_135] : memref<2x1x32xf32, #tpu.memory_space<vmem>>, vector<1x1x32xf32>
    %358 = vector.shape_cast %357 : vector<1x1x32xf32> to vector<1x32xf32>
    %cst_136 = arith.constant dense<0.000000e+00> : vector<16xf32>
    %359 = vector.multi_reduction <add>, %354, %cst_136 [1] : vector<16x32xf32> to vector<16xf32>
    %360 = vector.shape_cast %359 : vector<16xf32> to vector<16x1xf32>
    %cst_137 = arith.constant 3.200000e+01 : f32
    %361 = vector.broadcast %cst_137 : f32 to vector<16x1xf32>
    %362 = arith.divf %360, %361 : vector<16x1xf32>
    %363 = vector.broadcast %362 : vector<16x1xf32> to vector<16x32xf32>
    %364 = arith.subf %354, %363 : vector<16x32xf32>
    %365 = arith.mulf %364, %364 : vector<16x32xf32>
    %cst_138 = arith.constant dense<0.000000e+00> : vector<16xf32>
    %366 = vector.multi_reduction <add>, %365, %cst_138 [1] : vector<16x32xf32> to vector<16xf32>
    %367 = vector.shape_cast %366 : vector<16xf32> to vector<16x1xf32>
    %cst_139 = arith.constant 3.200000e+01 : f32
    %368 = vector.broadcast %cst_139 : f32 to vector<16x1xf32>
    %369 = arith.divf %367, %368 : vector<16x1xf32>
    %cst_140 = arith.constant 9.99999996E-13 : f32
    %370 = vector.broadcast %cst_140 : f32 to vector<16x1xf32>
    %371 = arith.addf %369, %370 : vector<16x1xf32>
    %372 = math.rsqrt %371 : vector<16x1xf32>
    %373 = vector.broadcast %372 : vector<16x1xf32> to vector<16x32xf32>
    %374 = arith.mulf %364, %373 : vector<16x32xf32>
    %375 = vector.broadcast %356 : vector<1x32xf32> to vector<16x32xf32>
    %376 = arith.mulf %374, %375 : vector<16x32xf32>
    %377 = vector.broadcast %358 : vector<1x32xf32> to vector<16x32xf32>
    %378 = arith.addf %376, %377 : vector<16x32xf32>
    %c1_141 = arith.constant 1 : index
    %c0_142 = arith.constant 0 : index
    %c0_143 = arith.constant 0 : index
    %379 = vector.load %arg10[%c1_141, %c0_142, %c0_143] : memref<2x32x64xbf16, #tpu.memory_space<vmem>>, vector<1x32x64xbf16>
    %380 = vector.shape_cast %379 : vector<1x32x64xbf16> to vector<32x64xbf16>
    %381 = arith.truncf %378 : vector<16x32xf32> to vector<16x32xbf16>
    %cst_144 = arith.constant dense<0.000000e+00> : vector<16x64xf32>
    %382 = tpu.matmul %381, %380, %cst_144 {dimension_numbers = #tpu.dot_dimension_numbers<[1], [0], [0], [1], [0, 0, 1, 1], [], []>} : vector<16x32xbf16>, vector<32x64xbf16>, vector<16x64xf32> -> vector<16x64xf32>
    %c1_145 = arith.constant 1 : index
    %c0_146 = arith.constant 0 : index
    %c0_147 = arith.constant 0 : index
    %383 = vector.load %arg11[%c1_145, %c0_146, %c0_147] : memref<2x1x64xf32, #tpu.memory_space<vmem>>, vector<1x1x64xf32>
    %384 = vector.shape_cast %383 : vector<1x1x64xf32> to vector<1x64xf32>
    %385 = vector.broadcast %384 : vector<1x64xf32> to vector<16x64xf32>
    %386 = arith.addf %382, %385 : vector<16x64xf32>
    %cst_148 = arith.constant 5.000000e-01 : f32
    %387 = vector.broadcast %cst_148 : f32 to vector<16x64xf32>
    %388 = arith.mulf %387, %386 : vector<16x64xf32>
    %cst_149 = arith.constant 4.471500e-02 : f32
    %389 = vector.broadcast %cst_149 : f32 to vector<16x64xf32>
    %390 = arith.mulf %389, %386 : vector<16x64xf32>
    %391 = arith.mulf %390, %386 : vector<16x64xf32>
    %392 = arith.mulf %391, %386 : vector<16x64xf32>
    %393 = arith.addf %386, %392 : vector<16x64xf32>
    %cst_150 = arith.constant 0.797884583 : f32
    %394 = vector.broadcast %cst_150 : f32 to vector<16x64xf32>
    %395 = arith.mulf %394, %393 : vector<16x64xf32>
    %396 = math.tanh %395 : vector<16x64xf32>
    %cst_151 = arith.constant 1.000000e+00 : f32
    %397 = vector.broadcast %cst_151 : f32 to vector<16x64xf32>
    %398 = arith.addf %397, %396 : vector<16x64xf32>
    %399 = arith.mulf %388, %398 : vector<16x64xf32>
    %c1_152 = arith.constant 1 : index
    %c0_153 = arith.constant 0 : index
    %c0_154 = arith.constant 0 : index
    %400 = vector.load %arg12[%c1_152, %c0_153, %c0_154] : memref<2x64x32xbf16, #tpu.memory_space<vmem>>, vector<1x64x32xbf16>
    %401 = vector.shape_cast %400 : vector<1x64x32xbf16> to vector<64x32xbf16>
    %402 = arith.truncf %399 : vector<16x64xf32> to vector<16x64xbf16>
    %cst_155 = arith.constant dense<0.000000e+00> : vector<16x32xf32>
    %403 = tpu.matmul %402, %401, %cst_155 {dimension_numbers = #tpu.dot_dimension_numbers<[1], [0], [0], [1], [0, 0, 1, 1], [], []>} : vector<16x64xbf16>, vector<64x32xbf16>, vector<16x32xf32> -> vector<16x32xf32>
    %c1_156 = arith.constant 1 : index
    %c0_157 = arith.constant 0 : index
    %c0_158 = arith.constant 0 : index
    %404 = vector.load %arg13[%c1_156, %c0_157, %c0_158] : memref<2x1x32xf32, #tpu.memory_space<vmem>>, vector<1x1x32xf32>
    %405 = vector.shape_cast %404 : vector<1x1x32xf32> to vector<1x32xf32>
    %406 = vector.broadcast %405 : vector<1x32xf32> to vector<16x32xf32>
    %407 = arith.addf %403, %406 : vector<16x32xf32>
    %408 = arith.addf %378, %407 : vector<16x32xf32>
    %c1_159 = arith.constant 1 : index
    %c0_160 = arith.constant 0 : index
    %c0_161 = arith.constant 0 : index
    %409 = vector.load %arg14[%c1_159, %c0_160, %c0_161] : memref<2x1x32xf32, #tpu.memory_space<vmem>>, vector<1x1x32xf32>
    %410 = vector.shape_cast %409 : vector<1x1x32xf32> to vector<1x32xf32>
    %c1_162 = arith.constant 1 : index
    %c0_163 = arith.constant 0 : index
    %c0_164 = arith.constant 0 : index
    %411 = vector.load %arg15[%c1_162, %c0_163, %c0_164] : memref<2x1x32xf32, #tpu.memory_space<vmem>>, vector<1x1x32xf32>
    %412 = vector.shape_cast %411 : vector<1x1x32xf32> to vector<1x32xf32>
    %cst_165 = arith.constant dense<0.000000e+00> : vector<16xf32>
    %413 = vector.multi_reduction <add>, %408, %cst_165 [1] : vector<16x32xf32> to vector<16xf32>
    %414 = vector.shape_cast %413 : vector<16xf32> to vector<16x1xf32>
    %cst_166 = arith.constant 3.200000e+01 : f32
    %415 = vector.broadcast %cst_166 : f32 to vector<16x1xf32>
    %416 = arith.divf %414, %415 : vector<16x1xf32>
    %417 = vector.broadcast %416 : vector<16x1xf32> to vector<16x32xf32>
    %418 = arith.subf %408, %417 : vector<16x32xf32>
    %419 = arith.mulf %418, %418 : vector<16x32xf32>
    %cst_167 = arith.constant dense<0.000000e+00> : vector<16xf32>
    %420 = vector.multi_reduction <add>, %419, %cst_167 [1] : vector<16x32xf32> to vector<16xf32>
    %421 = vector.shape_cast %420 : vector<16xf32> to vector<16x1xf32>
    %cst_168 = arith.constant 3.200000e+01 : f32
    %422 = vector.broadcast %cst_168 : f32 to vector<16x1xf32>
    %423 = arith.divf %421, %422 : vector<16x1xf32>
    %cst_169 = arith.constant 9.99999996E-13 : f32
    %424 = vector.broadcast %cst_169 : f32 to vector<16x1xf32>
    %425 = arith.addf %423, %424 : vector<16x1xf32>
    %426 = math.rsqrt %425 : vector<16x1xf32>
    %427 = vector.broadcast %426 : vector<16x1xf32> to vector<16x32xf32>
    %428 = arith.mulf %418, %427 : vector<16x32xf32>
    %429 = vector.broadcast %410 : vector<1x32xf32> to vector<16x32xf32>
    %430 = arith.mulf %428, %429 : vector<16x32xf32>
    %431 = vector.broadcast %412 : vector<1x32xf32> to vector<16x32xf32>
    %432 = arith.addf %430, %431 : vector<16x32xf32>
    %c0_170 = arith.constant 0 : index
    %c0_171 = arith.constant 0 : index
    %433 = vector.load %arg16[%c0_170, %c0_171] : memref<32x32xbf16, #tpu.memory_space<vmem>>, vector<32x32xbf16>
    %434 = arith.truncf %432 : vector<16x32xf32> to vector<16x32xbf16>
    %cst_172 = arith.constant dense<0.000000e+00> : vector<16x32xf32>
    %435 = tpu.matmul %434, %433, %cst_172 {dimension_numbers = #tpu.dot_dimension_numbers<[1], [0], [0], [1], [0, 0, 1, 1], [], []>} : vector<16x32xbf16>, vector<32x32xbf16>, vector<16x32xf32> -> vector<16x32xf32>
    %c0_173 = arith.constant 0 : index
    %c0_174 = arith.constant 0 : index
    %436 = vector.load %arg17[%c0_173, %c0_174] : memref<1x32xf32, #tpu.memory_space<vmem>>, vector<1x32xf32>
    %437 = vector.broadcast %436 : vector<1x32xf32> to vector<16x32xf32>
    %438 = arith.addf %435, %437 : vector<16x32xf32>
    %439 = math.tanh %438 : vector<16x32xf32>
    %c0_175 = arith.constant 0 : index
    %c0_176 = arith.constant 0 : index
    %440 = vector.load %arg18[%c0_175, %c0_176] : memref<16x32xf32, #tpu.memory_space<vmem>>, vector<16x32xf32>
    tpu.vector_store %arg18[%c0_175, %c0_176], %439 {strides = array<i32>} : memref<16x32xf32, #tpu.memory_space<vmem>>, vector<16x32xf32>,
    return
  }
}

</mosaic_0001>

<bundles_post_ra>
// kernel: tpu_custom_call.1
= control target key start
LH: loop header
LB: loop body
LE: loop exit
PB: predicated region body
PF: predicated region fallthrough
CT: control target
= control target key end

     0   :  { %s3513_s0 = inlined_call_operand.hbm [shape: f32[16,32], index: 0, kind: input, shape index: {}]   ;;  %s3514_s1 = inlined_call_operand.hbm [shape: f32[2,8], index: 1, kind: input, shape index: {}]   ;;  %s3515_s2 = inlined_call_operand.hbm [shape: f32[1,32], index: 2, kind: input, shape index: {}]   ;;  %s3516_s3 = inlined_call_operand.hbm [shape: f32[1,32], index: 3, kind: input, shape index: {}]   ;;  %s3517_s4 = inlined_call_operand.vmem [shape: bf16[2,32,96], index: 4, kind: input, shape index: {}]   ;;  %s3518_s5 = inlined_call_operand.hbm [shape: f32[2,1,96], index: 5, kind: input, shape index: {}]   ;;  %s3519_s6 = inlined_call_operand.vmem [shape: bf16[2,32,32], index: 6, kind: input, shape index: {}]   ;;  %s3520_s7 = inlined_call_operand.hbm [shape: f32[2,1,32], index: 7, kind: input, shape index: {}]   ;;  %s3521_s8 = inlined_call_operand.hbm [shape: f32[2,1,32], index: 8, kind: input, shape index: {}]   ;;  %s3522_s9 = inlined_call_operand.hbm [shape: f32[2,1,32], index: 9, kind: input, shape index: {}]   ;;  %s3523_s10 = inlined_call_operand.vmem [shape: bf16[2,32,64], index: 10, kind: input, shape index: {}]   ;;  %s3524_s11 = inlined_call_operand.vmem [shape: f32[2,1,64], index: 11, kind: input, shape index: {}]   ;;  %s3525_s12 = inlined_call_operand.vmem [shape: bf16[2,64,32], index: 12, kind: input, shape index: {}]   ;;  %s3526_s13 = inlined_call_operand.vmem [shape: f32[2,1,32], index: 13, kind: input, shape index: {}]   ;;  %s3527_s14 = inlined_call_operand.vmem [shape: f32[2,1,32], index: 14, kind: input, shape index: {}]   ;;  %s3528_s15 = inlined_call_operand.vmem [shape: f32[2,1,32], index: 15, kind: input, shape index: {}]   ;;  %s3529_s16 = inlined_call_operand.vmem [shape: bf16[32,32], index: 16, kind: input, shape index: {}]   ;;  %s3530_s17 = inlined_call_operand.vmem [shape: f32[1,32], index: 17, kind: input, shape index: {}]   ;;  %s3531_s18 = inlined_call_operand.hbm [shape: f32[16,32], index: 18, kind: output, shape index: {}]  }
   0x1   :  { %3532 = sst [smem:[#allocation23_spill]] %s3513_s0 }
   0x2   :  { %3533 = sst [smem:[#allocation24_spill]] %s3514_s1 }
   0x3   :  { %3534 = sst [smem:[#allocation25_spill]] %s3515_s2 }
   0x4   :  { %23 = vsyncpa [#allocation3], 0 }
   0x5   :  { %24 = vsyncpa [#allocation6], 0 }
   0x6   :  { %25 = vsyncpa [#allocation9], 0 }
   0x7   :  { %26 = vsyncpa [#allocation12], 0 }
   0x8   :  { %27 = vsyncpa [#allocation15], 0 }
   0x9   :  { %28 = vsyncpa [#allocation4], 0  ;;  %s2968_s27 = smov [#allocation5]   ;;  %s2969_s29 = smov [#allocation8]  }
   0xa   :  { %s47_s28 = sshll.u32 %s2968_s27, 4  ;;  %s67_s30 = sshll.u32 %s2969_s29, 4  ;;  %s48_s28 = int_to_ptr.vmem [resolvable:$true] %s47_s28  ;;  %s68_s30 = int_to_ptr.vmem [resolvable:$true] %s67_s30 }
   0xb   :  { %s2784_s0 = scalar_lea.vmem %s48_s28, 32  ;;  %p2789_p1 = scmp.lt.s32.totalorder %s48_s28, %s48_s28 }
   0xc   :  { %p2785_p0 = scmp.ne.s32.totalorder %s48_s28, %s2784_s0  ;;  %p2790_p2 = scmp.lt.s32.totalorder %s2784_s0, %s2784_s0 }
   0xe   :  { %p2791_p3 = por %p2790_p2, %p2789_p1 }
  0x10   :  { %p2792_p4 = pnand %p2791_p3, %p2785_p0 }
  0x12   :  { %2795 = shalt.err (!%p2792_p4)
}
  0x13   :  { %s3535_s20 = sld [smem:[#allocation24_spill]]  ;;  %s2804_s21 = scalar_lea.vmem %s68_s30, 16 }
  0x14   :  { %p2805_p5 = scmp.ne.s32.totalorder %s68_s30, %s2804_s21  ;;  %s2808_s22 = scalar_lea.vmem %s68_s30, 32 }
  0x15   :  { %p2809_p6 = scmp.lt.s32.totalorder %s68_s30, %s68_s30  ;;  %p2810_p7 = scmp.lt.s32.totalorder %s2808_s22, %s2804_s21 }
  0x17   :  { %p2811_p8 = por %p2810_p7, %p2809_p6 }
  0x19   :  { %50 = dma.hbm_to_vmem [thread:$0]  %s3535_s20, 32, %s48_s28, [#allocation6]  }
  0x1a   :  { %p2812_p9 = pnand %p2811_p8, %p2805_p5 }
  0x1c   :  { %2815 = shalt.err (!%p2812_p9)
}
  0x1d   :  { %70 = dma.hbm_to_vmem [thread:$0]  %s3516_s3, 16, %s68_s30, [#allocation9]  }
  0x1e   :  { %s2970_s24 = smov [#allocation11]   ;;  %s2971_s26 = smov [#allocation2]  }
  0x1f   :  { %s92_s25 = sshll.u32 %s2970_s24, 4  ;;  %s34_s27 = sshll.u32 %s2971_s26, 4  ;;  %s93_s25 = int_to_ptr.vmem [resolvable:$true] %s92_s25  ;;  %s35_s27 = int_to_ptr.vmem [resolvable:$true] %s34_s27 }
  0x20   :  { %s2824_s29 = scalar_lea.vmem %s93_s25, 32  ;;  %p2829_p11 = scmp.lt.s32.totalorder %s93_s25, %s93_s25 }
  0x21   :  { %p2825_p10 = scmp.ne.s32.totalorder %s93_s25, %s2824_s29  ;;  %p2830_p12 = scmp.lt.s32.totalorder %s2824_s29, %s2824_s29 }
  0x23   :  { %p2831_p13 = por %p2830_p12, %p2829_p11 }
  0x25   :  { %p2832_p0 = pnand %p2831_p13, %p2825_p10 }
  0x27   :  { %2835 = shalt.err (!%p2832_p0)
}
  0x28   :  { %s2972_s28 = smov 16   ;;  %s2973_s0 = smov 1  }
  0x29   :  { %98 = dma.hbm_to_vmem [thread:$0]  %s3520_s7, 32, %s93_s25, [#allocation12], %s2972_s28, %s2972_s28, %s2973_s0  }
  0x2a   :  { %s2844_s30 = scalar_lea.vmem %s35_s27, 256  ;;  %p2849_p2 = scmp.lt.s32.totalorder %s35_s27, %s35_s27 }
  0x2b   :  { %p2845_p1 = scmp.ne.s32.totalorder %s35_s27, %s2844_s30  ;;  %p2850_p3 = scmp.lt.s32.totalorder %s2844_s30, %s2844_s30 }
  0x2d   :  { %p2851_p4 = por %p2850_p3, %p2849_p2 }
  0x2f   :  { %p2852_p5 = pnand %p2851_p4, %p2845_p1 }
  0x31   :  { %2855 = shalt.err (!%p2852_p5)
}
  0x32   :  { %s2974_s1 = smov 128   ;;  %s2975_s20 = smov 8  }
  0x33   :  { %s3536_s2 = sld [smem:[#allocation23_spill]]  ;;  %s2976_s23 = smov [#allocation7]  }
  0x34   :  { %s57_s24 = sshll.u32 %s2976_s23, 4  ;;  %s2977_s26 = smov [#allocation10]   ;;  %s58_s24 = int_to_ptr.vmem [resolvable:$true] %s57_s24 }
  0x35   :  { %s78_s7 = sshll.u32 %s2977_s26, 4  ;;  %s2864_s25 = scalar_lea.vmem %s58_s24, 16  ;;  %s79_s7 = int_to_ptr.vmem [resolvable:$true] %s78_s7 }
  0x36   :  { %p2865_p6 = scmp.ne.s32.totalorder %s58_s24, %s2864_s25  ;;  %s2868_s29 = scalar_lea.vmem %s58_s24, 32 }
  0x37   :  { %p2869_p7 = scmp.lt.s32.totalorder %s58_s24, %s58_s24  ;;  %p2870_p8 = scmp.lt.s32.totalorder %s2868_s29, %s2864_s25 }
  0x39   :  { %40 = dma.hbm_to_vmem [thread:$0]  %s3536_s2, 256, %s35_s27, [#allocation3], %s2974_s1, %s2974_s1, %s2975_s20  }
  0x3a   :  { %p2871_p9 = por %p2870_p8, %p2869_p7 }
  0x3c   :  { %p2872_p10 = pnand %p2871_p9, %p2865_p6 }
  0x3e   :  { %2875 = shalt.err (!%p2872_p10)
}
  0x3f   :  { %s3537_s30 = sld [smem:[#allocation25_spill]]  ;;  %s2884_s21 = scalar_lea.vmem %s79_s7, 32 }
  0x40   :  { %p2885_p11 = scmp.ne.s32.totalorder %s79_s7, %s2884_s21  ;;  %p2889_p12 = scmp.lt.s32.totalorder %s79_s7, %s79_s7 }
  0x41   :  { %p2890_p13 = scmp.lt.s32.totalorder %s2884_s21, %s2884_s21 }
  0x43   :  { %p2891_p0 = por %p2890_p13, %p2889_p12 }
  0x45   :  { %60 = dma.hbm_to_vmem [thread:$0]  %s3537_s30, 16, %s58_s24, [#allocation6]  }
  0x46   :  { %p2892_p1 = pnand %p2891_p0, %p2885_p11 }
  0x48   :  { %2895 = shalt.err (!%p2892_p1)
}
  0x49   :  { %84 = dma.hbm_to_vmem [thread:$0]  %s3518_s5, 32, %s79_s7, [#allocation9], %s2972_s28, %s2972_s28, %s2973_s0  }
  0x4a   :  { %s2978_s2 = smov [#allocation13]   ;;  %s2979_s26 = smov [#allocation14]  }
  0x4b   :  { %s104_s23 = sshll.u32 %s2978_s2, 4  ;;  %s116_s25 = sshll.u32 %s2979_s26, 4  ;;  %s105_s23 = int_to_ptr.vmem [resolvable:$true] %s104_s23  ;;  %s117_s25 = int_to_ptr.vmem [resolvable:$true] %s116_s25 }
  0x4c   :  { %s2904_s24 = scalar_lea.vmem %s105_s23, 32  ;;  %p2909_p3 = scmp.lt.s32.totalorder %s105_s23, %s105_s23 }
  0x4d   :  { %p2905_p2 = scmp.ne.s32.totalorder %s105_s23, %s2904_s24  ;;  %p2910_p4 = scmp.lt.s32.totalorder %s2904_s24, %s2904_s24 }
  0x4f   :  { %p2911_p5 = por %p2910_p4, %p2909_p3 }
  0x51   :  { %p2912_p6 = pnand %p2911_p5, %p2905_p2 }
  0x53   :  { %2915 = shalt.err (!%p2912_p6)
}
  0x54   :  { %110 = dma.hbm_to_vmem [thread:$0]  %s3521_s8, 32, %s105_s23, [#allocation12], %s2972_s28, %s2972_s28, %s2973_s0  }
  0x55   :  { %s2924_s5 = scalar_lea.vmem %s117_s25, 32  ;;  %p2929_p8 = scmp.lt.s32.totalorder %s117_s25, %s117_s25 }
  0x56   :  { %p2925_p7 = scmp.ne.s32.totalorder %s117_s25, %s2924_s5  ;;  %p2930_p9 = scmp.lt.s32.totalorder %s2924_s5, %s2924_s5 }
  0x58   :  { %p2931_p10 = por %p2930_p9, %p2929_p8 }
  0x5a   :  { %p2932_p11 = pnand %p2931_p10, %p2925_p7 }
  0x5c   :  { %2935 = shalt.err (!%p2932_p11)
}
  0x5d   :  { %122 = dma.hbm_to_vmem [thread:$0]  %s3522_s9, 32, %s117_s25, [#allocation15], %s2972_s28, %s2972_s28, %s2973_s0  }
  0x5e   :  { %2956 = dma.done.wait [#allocation3], 256  }
  0x5f   :  { %2957 = vsyncadd [#allocation3], 4294967040 }
  0x60   :  { %2958 = dma.done.wait [#allocation6], 48  }
  0x61   :  { %2959 = vsyncadd [#allocation6], 4294967248 }
  0x62   :  { %2960 = dma.done.wait [#allocation9], 48  }
  0x63   :  { %2961 = vsyncadd [#allocation9], 4294967248 }
  0x64   :  { %2962 = dma.done.wait [#allocation12], 64  }
  0x65   :  { %2963 = vsyncadd [#allocation12], 4294967232 }
  0x66   :  { %2964 = dma.done.wait [#allocation15], 32  }
  0x67   :  { %2965 = vsyncadd [#allocation15], 4294967264  ;;  %vm174_vm0 = vcmask 261120   ;;  %v170_v0 = vld [vmem:[#allocation2] sm:$0xff]  ;;  %v171_v1 = vld [vmem:[#allocation2 + $0x8] sm:$0xff]  ;;  %v2980_v15 = vmov 0.0   ;;  %v342_v47 = vlaneseq }
  0x68   :  { %v175_v2 = vsel %vm174_vm0, %v170_v0, 0.0  ;;  %v178_v3 = vsel %vm174_vm0, %v171_v1, 0.0  ;;  %v2690_v14 = vld [vmem:[%s3517_s4 + $0x8] sm:$0xff]   ;;  %2462 = vmatprep.subr.bf16.mxu0 %v2980_v15  ;;  %vm2981_vm1 = vmmov 0   ;;  %v2691_v16 = vld [vmem:[%s3517_s4] sm:$0xff]   ;;  %2470 = vmatprep.subr.bf16.mxu1 %v2980_v15  ;;  %s2982_s30 = smov 80  }
  0x69   :  { %176 = vadd.xlane.f32.xlu0 %v175_v2  ;;  %2466 = vmatprep.mubr.msk.bf16.mxu0 %vm2981_vm1, %v2980_v15  ;;  %v2293_v25 = vld [vmem:[#allocation7] ss:$0 sm:$0xff]  ;;  %v2294_v29 = vld [vmem:[#allocation8] ss:$0 sm:$0xff]  ;;  %v2295_v34 = vld [vmem:[#allocation10] ss:$0 sm:$0xff] }
  0x6a   :  { %2463 = vmatpush3.bf16.msra.mxu0 %v2690_v14  ;;  %2472 = vmatprep.mubr.msk.bf16.mxu1 %vm2981_vm1, %v2980_v15  ;;  %s2983_s21 = smov 96   ;;  %s2984_s27 = smov 112   ;;  %vm294_vm2 = vcmask 130048   ;;  %v164_v48 = vld [vmem:[#allocation5] sm:$0x1]  ;;  %v3168_v50 = vshrl.u32 %v342_v47, 7 }
  0x6b   :  { %2464 = vmatprep.subr.bf16.mxu0 %v2980_v15  ;;  %v165_v49 = vsub.f32 1.0, %v164_v48  ;;  %vm347_vm3 = vcmask 64512   ;;  %s2985_s22 = smov 64   ;;  %vm365_vm4 = vcmask 1043456   ;;  %s2986_s2 = smov 48   ;;  %vm1118_vm5 = vcmask 523264  }
  0x6c   :  { %v344_v52 = vsub.s32 0, %v3168_v50 }
  0x6d   :  { %179 = vadd.xlane.f32.xlu0 %v178_v3  ;;  %v166_v51 = vmul.f32 -10000.0, %v165_v49 }
  0x6e   :  { %2465 = vmatpush3.bf16.msra.mxu0 %v2691_v16 }
  0x6f   :  { %2476 = vmatprep.subr.bf16.mxu0 %v2980_v15  ;;  %v3173_v53 = vrot.slane %v166_v51, %v344_v52  ;;  %v167_v51 = vld [vmem:[#allocation5 + $0x1] sm:$0x1] }
  0xf2   :  { %v177_v4 = vpop.xlane.xlu0 %176 }
  0xf3   :  { %v182_v5 = vmul.f32 0.03125, %v177_v4 }
  0xf5   :  { %v184_v6 = vsub.f32 %v170_v0, %v182_v5 }
  0xf6   :  { %v180_v7 = vpop.xlane.xlu0 %179 }
  0xf7   :  { %v183_v8 = vmul.f32 0.03125, %v180_v7  ;;  %v186_v9 = vmul.f32 %v184_v6, %v184_v6 }
  0xf9   :  { %v185_v10 = vsub.f32 %v171_v1, %v183_v8  ;;  %v188_v11 = vsel %vm174_vm0, %v186_v9, 0.0 }
  0xfa   :  { %189 = vadd.xlane.f32.xlu1 %v188_v11 }
  0xfb   :  { %v187_v12 = vmul.f32 %v185_v10, %v185_v10 }
  0xfd   :  { %v191_v13 = vsel %vm174_vm0, %v187_v12, 0.0 }
  0xfe   :  { %192 = vadd.xlane.f32.xlu1 %v191_v13 }
 0x183   :  { %v190_v17 = vpop.xlane.xlu1 %189 }
 0x184   :  { %v194_v18 = vmul.f32 0.03125, %v190_v17 }
 0x186   :  { %v196_v19 = vadd.f32 1e-12, %v194_v18 }
 0x187   :  { %v193_v20 = vpop.xlane.xlu1 %192 }
 0x188   :  { %2712 = vrsqrt.f32 %v196_v19  ;;  %v195_v21 = vmul.f32 0.03125, %v193_v20 }
 0x18a   :  { %v197_v22 = vadd.f32 1e-12, %v195_v21 }
 0x18c   :  { %2714 = vrsqrt.f32 %v197_v22 }
 0x195   :  { %v2713_v23 = vpop.eup %2712 }
 0x196   :  { %v200_v24 = vmul.f32 %v2713_v23, %v184_v6 }
 0x198   :  { %v208_v28 = vmul.f32 %v2293_v25, %v200_v24 }
 0x199   :  { %v2715_v26 = vpop.eup %2714 }
 0x19a   :  { %v201_v27 = vmul.f32 %v2715_v26, %v185_v10  ;;  %v3140_v31 = vadd.f32 %v2294_v29, %v208_v28  ;;  %v3206_v28 = vld [vmem:[%s3519_s6] sm:$0xff]  }
 0x19c   :  { %v209_v30 = vmul.f32 %v2293_v25, %v201_v27 }
 0x19e   :  { %v3142_v32 = vadd.f32 %v2294_v29, %v209_v30  ;;  %v2693_v29 = vld [vmem:[%s3519_s6 + $0x8] sm:$0xff]  }
 0x1a0   :  { %v226_v33 = vpack.c.bf16 %v3142_v32, %v3140_v31 }
 0x1a2   :  { %2467 = vmatmul.mubr.msk.bf16.vlgmr.msra.gmra.mxu0 %vm174_vm0, %v226_v33 }
 0x1a3   :  { %2478 = vmatprep.mubr.msk.bf16.mxu0 %vm2981_vm1, %v2980_v15 }
 0x262   :  { %v283_v35 = vpop.f32.mrf.mxu0 }
 0x263   :  { %v284_v36 = vadd.f32 %v2295_v34, %v283_v35 }
 0x264   :  { %v2468_v37 = vpop.f32.mrf.mxu0 }
 0x265   :  { %v3149_v38 = vpack.c.bf16 %v284_v36, %v284_v36 }
 0x266   :  { %v286_v39 = vpop.f32.mrf.mxu0 }
 0x267   :  { %v287_v40 = vadd.f32 %v2295_v34, %v286_v39  ;;  %412 = vrot.lane.b32.xlu1 %v3149_v38, %s2982_s30  ;;  %292 = vrot.lane.b32.xlu0 %v3149_v38, %s2983_s21 }
 0x268   :  { %v2469_v41 = vpop.f32.mrf.mxu0 }
 0x269   :  { %v3181_v4 = vpack.c.bf16 %v287_v40, %v287_v40 }
 0x26b   :  { %410 = vrot.lane.b32.xlu1 %v3149_v38, %s2984_s27 }
 0x2d9   :  { %v293_v42 = vpop.permute.xlu0 %292  ;;  %v413_v44 = vpop.permute.xlu1 %412 }
 0x2da   :  { %v299_v43 = vsel %vm294_vm2, %v293_v42, 0  ;;  %v418_v45 = vsel %vm294_vm2, %v413_v44, 0 }
 0x2db   :  { %2471 = vmatpush3.bf16.xpose.msra.mxu1 %v299_v43 }
 0x2dc   :  { %2482 = vmatprep.subr.bf16.mxu1 %v2980_v15 }
 0x2dd   :  { %v411_v46 = vpop.permute.xlu1 %410 }
 0x2e2   :  { %2473 = vmatmul.mubr.msk.bf16.vlgmr.msra.gmra.mxu1 %vm294_vm2, %v3149_v38 }
 0x2e3   :  { %2483 = vmatpush3.bf16.xpose.msra.mxu1 %v418_v45  ;;  %2484 = vmatprep.mubr.msk.bf16.mxu1 %vm2981_vm1, %v2980_v15 }
 0x2e4   :  { %2494 = vmatprep.subr.bf16.mxu1 %v2980_v15 }
 0x2ea   :  { %2485 = vmatmul.mubr.msk.bf16.vlgmr.msra.gmra.mxu1 %vm294_vm2, %v411_v46 }
 0x2eb   :  { %2496 = vmatprep.mubr.msk.bf16.mxu1 %vm2981_vm1, %v2980_v15  ;;  %2495 = vmatpush3.bf16.msra.mxu1 %v2693_v29 }
 0x2ec   :  { %2506 = vmatprep.subr.bf16.mxu1 %v2980_v15 }
 0x3a2   :  { %v335_v54 = vpop.f32.mrf.mxu1 }
 0x3a3   :  { %v341_v55 = vmul.f32 0.25, %v335_v54 }
 0x3a4   :  { %v2474_v56 = vpop.f32.mrf.mxu1 }
 0x3a5   :  { %v346_v57 = vadd.f32 %v3173_v53, %v341_v55  ;;  %v168_v55 = vsub.f32 1.0, %v167_v51 }
 0x3a6   :  { %v338_v58 = vpop.f32.mrf.mxu1 }
 0x3a7   :  { %v348_v59 = vsel %vm347_vm3, %v346_v57, -inf }
 0x3a8   :  { %v2475_v60 = vpop.f32.mrf.mxu1  ;;  %349 = vmax.xlane.f32.xlu1 %v348_v59  ;;  %v169_v59 = vmul.f32 -10000.0, %v168_v55 }
 0x3aa   :  { %v454_v61 = vpop.f32.mrf.mxu1 }
 0x3ab   :  { %v460_v62 = vmul.f32 0.25, %v454_v61 }
 0x3ac   :  { %v2486_v63 = vpop.f32.mrf.mxu1 }
 0x3ad   :  { %v461_v0 = vadd.f32 %v460_v62, %v3173_v53  ;;  %v3234_v62 = vrot.slane %v169_v59, %v344_v52 }
 0x3ae   :  { %v457_v1 = vpop.f32.mrf.mxu1 }
 0x3af   :  { %v462_v2 = vsel %vm347_vm3, %v461_v0, -inf }
 0x3b0   :  { %v2487_v3 = vpop.f32.mrf.mxu1  ;;  %463 = vmax.xlane.f32.xlu0 %v462_v2 }
 0x3b9   :  { %360 = vrot.lane.b32.xlu1 %v3149_v38, %s2985_s22 }
 0x3bd   :  { %623 = vrot.lane.b32.xlu1 %v3181_v4, %s2983_s21 }
 0x3c1   :  { %740 = vrot.lane.b32.xlu1 %v3181_v4, %s2982_s30 }
 0x3c5   :  { %738 = vrot.lane.b32.xlu1 %v3181_v4, %s2984_s27 }
 0x431   :  { %v350_v5 = vpop.xlane.xlu1 %349 }
 0x432   :  { %v351_v6 = vsub.f32 %v346_v57, %v350_v5 }
 0x434   :  { %v352_v7 = vmul.f32 1.442695, %v351_v6 }
 0x435   :  { %v361_v8 = vpop.permute.xlu1 %360 }
 0x436   :  { %2716 = vpow2.f32 %v352_v7  ;;  %v367_v9 = vsel %vm365_vm4, %v361_v8, 0 }
 0x437   :  { %2477 = vmatpush3.bf16.msra.mxu0 %v367_v9 }
 0x438   :  { %2488 = vmatprep.subr.bf16.mxu0 %v2980_v15 }
 0x439   :  { %v464_v10 = vpop.xlane.xlu0 %463  ;;  %v624_v37 = vpop.permute.xlu1 %623 }
 0x43a   :  { %v465_v11 = vsub.f32 %v461_v0, %v464_v10  ;;  %v629_v41 = vsel %vm294_vm2, %v624_v37, 0 }
 0x43c   :  { %v466_v12 = vmul.f32 1.442695, %v465_v11 }
 0x43d   :  { %v741_v44 = vpop.permute.xlu1 %740 }
 0x43e   :  { %2718 = vpow2.f32 %v466_v12  ;;  %v746_v45 = vsel %vm294_vm2, %v741_v44, 0  ;;  %v3242_v12 = vld [vmem:[#allocation11] ss:$0 sm:$0xff] }
 0x441   :  { %v739_v46 = vpop.permute.xlu1 %738 }
 0x443   :  { %v2717_v13 = vpop.eup %2716 }
 0x444   :  { %v354_v14 = vsel %vm347_vm3, %v2717_v13, 0.0 }
 0x445   :  { %355 = vadd.xlane.f32.xlu0 %v354_v14 }
 0x44b   :  { %v2719_v16 = vpop.eup %2718 }
 0x44c   :  { %v468_v17 = vsel %vm347_vm3, %v2719_v16, 0.0 }
 0x44d   :  { %469 = vadd.xlane.f32.xlu0 %v468_v17 }
 0x463   :  { %474 = vrot.lane.b32.xlu0 %v3149_v38, %s2986_s2 }
 0x4ce   :  { %v356_v18 = vpop.xlane.xlu0 %355 }
 0x4cf   :  { %2720 = vrcp.f32 %v356_v18 }
 0x4d6   :  { %v470_v19 = vpop.xlane.xlu0 %469 }
 0x4d7   :  { %2722 = vrcp.f32 %v470_v19 }
 0x4da   :  { %v475_v22 = vpop.permute.xlu0 %474 }
 0x4db   :  { %v480_v24 = vsel %vm365_vm4, %v475_v22, 0 }
 0x4dc   :  { %v2721_v20 = vpop.eup %2720 }
 0x4dd   :  { %v358_v21 = vmul.f32 %v2721_v20, %v2717_v13 }
 0x4df   :  { %v359_v23 = vpack.c.bf16 %v358_v21, %v358_v21 }
 0x4e1   :  { %2479 = vmatmul.mubr.msk.bf16.vlgmr.msra.gmra.mxu0 %vm347_vm3, %v359_v23 }
 0x4e2   :  { %2489 = vmatpush3.bf16.msra.mxu0 %v480_v24  ;;  %2490 = vmatprep.mubr.msk.bf16.mxu0 %vm2981_vm1, %v2980_v15 }
 0x4e3   :  { %2500 = vmatprep.subr.bf16.mxu0 %v2980_v15 }
 0x4e4   :  { %v2723_v25 = vpop.eup %2722 }
 0x4e5   :  { %v472_v26 = vmul.f32 %v2723_v25, %v2719_v16 }
 0x4e7   :  { %v473_v27 = vpack.c.bf16 %v472_v26, %v472_v26 }
 0x4e9   :  { %2491 = vmatmul.mubr.msk.bf16.vlgmr.msra.gmra.mxu0 %vm347_vm3, %v473_v27 }
 0x4ea   :  { %2502 = vmatprep.mubr.msk.bf16.mxu0 %vm2981_vm1, %v2980_v15  ;;  %2501 = vmatpush3.bf16.msra.mxu0 %v3206_v28 }
 0x4eb   :  { %2512 = vmatprep.subr.bf16.mxu0 %v2980_v15 }
 0x5a1   :  { %v403_v30 = vpop.f32.mrf.mxu0 }
 0x5a2   :  { %v409_v33 = vpack.c.bf16 %v403_v30, %v403_v30 }
 0x5a3   :  { %v2480_v34 = vpop.f32.mrf.mxu0 }
 0x5a4   :  { %2503 = vmatmul.mubr.msk.bf16.vlgmr.msra.gmra.mxu0 %vm294_vm2, %v409_v33 }
 0x5a5   :  { %v406_v35 = vpop.f32.mrf.mxu0  ;;  %2514 = vmatprep.mubr.msk.bf16.mxu0 %vm2981_vm1, %v2980_v15 }
 0x5a7   :  { %v2481_v36 = vpop.f32.mrf.mxu0 }
 0x5a9   :  { %v516_v38 = vpop.f32.mrf.mxu0 }
 0x5aa   :  { %v522_v39 = vpack.c.bf16 %v516_v38, %v516_v38 }
 0x5ab   :  { %v2492_v40 = vpop.f32.mrf.mxu0 }
 0x5ac   :  { %2497 = vmatmul.mubr.msk.bf16.vlgmr.msra.gmra.mxu1 %vm294_vm2, %v522_v39 }
 0x5ad   :  { %2507 = vmatpush3.bf16.xpose.msra.mxu1 %v629_v41  ;;  %v519_v42 = vpop.f32.mrf.mxu0  ;;  %2508 = vmatprep.mubr.msk.bf16.mxu1 %vm2981_vm1, %v2980_v15 }
 0x5ae   :  { %2518 = vmatprep.subr.bf16.mxu1 %v2980_v15 }
 0x5af   :  { %v2493_v43 = vpop.f32.mrf.mxu0 }
 0x5b4   :  { %2509 = vmatmul.mubr.msk.bf16.vlgmr.msra.gmra.mxu1 %vm294_vm2, %v3181_v4 }
 0x5b5   :  { %2519 = vmatpush3.bf16.xpose.msra.mxu1 %v746_v45  ;;  %2520 = vmatprep.mubr.msk.bf16.mxu1 %vm2981_vm1, %v2980_v15 }
 0x5b6   :  { %2530 = vmatprep.subr.bf16.mxu1 %v2980_v15 }
 0x5bc   :  { %2521 = vmatmul.mubr.msk.bf16.vlgmr.msra.gmra.mxu1 %vm294_vm2, %v739_v46 }
 0x5bd   :  { %2531 = vmatpush3.bf16.msra.mxu1 %v2693_v29  ;;  %2532 = vmatprep.mubr.msk.bf16.mxu1 %vm2981_vm1, %v2980_v15 }
 0x5be   :  { %2542 = vmatprep.subr.bf16.mxu1 %v2980_v15 }
 0x664   :  { %v615_v47 = vpop.f32.mrf.mxu0 }
 0x666   :  { %v2504_v48 = vpop.f32.mrf.mxu0 }
 0x668   :  { %v618_v49 = vpop.f32.mrf.mxu0 }
 0x66a   :  { %v2505_v54 = vpop.f32.mrf.mxu0 }
 0x66c   :  { %v566_v56 = vpop.f32.mrf.mxu1 }
 0x66d   :  { %v616_v57 = vadd.f32 %v615_v47, %v566_v56 }
 0x66e   :  { %v2498_v58 = vpop.f32.mrf.mxu1 }
 0x66f   :  { %v944_v13 = vadd.f32 %v3242_v12, %v616_v57 }
 0x670   :  { %v569_v60 = vpop.f32.mrf.mxu1 }
 0x671   :  { %v3246_v14 = vadd.f32 %v944_v13, %v3140_v31 }
 0x672   :  { %v2499_v61 = vpop.f32.mrf.mxu1 }
 0x673   :  { %v950_v16 = vsel %vm174_vm0, %v3246_v14, 0.0 }
 0x674   :  { %v665_v63 = vpop.f32.mrf.mxu1 }
 0x675   :  { %v671_v0 = vmul.f32 0.25, %v665_v63 }
 0x676   :  { %v2510_v1 = vpop.f32.mrf.mxu1 }
 0x677   :  { %v676_v2 = vadd.f32 %v3234_v62, %v671_v0 }
 0x678   :  { %v668_v3 = vpop.f32.mrf.mxu1 }
 0x679   :  { %v677_v5 = vsel %vm347_vm3, %v676_v2, -inf }
 0x67a   :  { %678 = vmax.xlane.f32.xlu0 %v677_v5  ;;  %v2511_v6 = vpop.f32.mrf.mxu1 }
 0x67c   :  { %v782_v7 = vpop.f32.mrf.mxu1 }
 0x67d   :  { %v788_v8 = vmul.f32 0.25, %v782_v7 }
 0x67e   :  { %v2522_v9 = vpop.f32.mrf.mxu1 }
 0x67f   :  { %v789_v10 = vadd.f32 %v788_v8, %v3234_v62 }
 0x680   :  { %v785_v11 = vpop.f32.mrf.mxu1 }
 0x681   :  { %v790_v50 = vsel %vm347_vm3, %v789_v10, -inf }
 0x682   :  { %791 = vmax.xlane.f32.xlu1 %v790_v50  ;;  %v2523_v52 = vpop.f32.mrf.mxu1  ;;  %v2694_v50 = vld [vmem:[%s3523_s10 + $0x8] sm:$0xff]  }
 0x693   :  { %802 = vrot.lane.b32.xlu1 %v3181_v4, %s2986_s2 }
 0x6b7   :  { %951 = vadd.xlane.f32.xlu1 %v950_v16 }
 0x703   :  { %v679_v17 = vpop.xlane.xlu0 %678 }
 0x704   :  { %v680_v18 = vsub.f32 %v676_v2, %v679_v17 }
 0x706   :  { %v681_v19 = vmul.f32 1.442695, %v680_v18 }
 0x708   :  { %2724 = vpow2.f32 %v681_v19 }
 0x70b   :  { %v792_v20 = vpop.xlane.xlu1 %791 }
 0x70c   :  { %v793_v21 = vsub.f32 %v789_v10, %v792_v20  ;;  %v2314_v20 = vld [vmem:[#allocation13] ss:$0 sm:$0xff] }
 0x70e   :  { %v794_v22 = vmul.f32 1.442695, %v793_v21 }
 0x70f   :  { %v803_v35 = vpop.permute.xlu1 %802 }
 0x710   :  { %2726 = vpow2.f32 %v794_v22  ;;  %v808_v37 = vsel %vm365_vm4, %v803_v35, 0  ;;  %v2316_v35 = vld [vmem:[%s3524_s11] ss:$0 sm:$0xff] }
 0x715   :  { %v2725_v23 = vpop.eup %2724 }
 0x716   :  { %v683_v24 = vsel %vm347_vm3, %v2725_v23, 0.0 }
 0x717   :  { %684 = vadd.xlane.f32.xlu0 %v683_v24  ;;  %v2315_v24 = vld [vmem:[#allocation14] ss:$0 sm:$0xff] }
 0x71d   :  { %v2727_v25 = vpop.eup %2726 }
 0x71e   :  { %v796_v31 = vsel %vm347_vm3, %v2727_v25, 0.0 }
 0x71f   :  { %797 = vadd.xlane.f32.xlu0 %v796_v31 }
 0x735   :  { %689 = vrot.lane.b32.xlu0 %v3181_v4, %s2985_s22 }
 0x740   :  { %v952_v54 = vpop.xlane.xlu1 %951 }
 0x741   :  { %v956_v57 = vmul.f32 0.03125, %v952_v54 }
 0x743   :  { %v958_v61 = vsub.f32 %v3246_v14, %v956_v57 }
 0x745   :  { %v960_v5 = vmul.f32 %v958_v61, %v958_v61 }
 0x747   :  { %v962_v6 = vsel %vm174_vm0, %v960_v5, 0.0 }
 0x7a0   :  { %v685_v26 = vpop.xlane.xlu0 %684 }
 0x7a1   :  { %2728 = vrcp.f32 %v685_v26 }
 0x7a8   :  { %v798_v27 = vpop.xlane.xlu0 %797 }
 0x7a9   :  { %2730 = vrcp.f32 %v798_v27 }
 0x7ac   :  { %v690_v29 = vpop.permute.xlu0 %689 }
 0x7ad   :  { %v695_v30 = vsel %vm365_vm4, %v690_v29, 0  ;;  %v2696_v29 = vld [vmem:[%s3525_s12 + $0x18] sm:$0xff]  }
 0x7ae   :  { %v2729_v33 = vpop.eup %2728  ;;  %2513 = vmatpush3.bf16.msra.mxu0 %v695_v30  ;;  %v2697_v30 = vld [vmem:[%s3525_s12 + $0x10] sm:$0xff]  }
 0x7af   :  { %2524 = vmatprep.subr.bf16.mxu0 %v2980_v15  ;;  %v687_v34 = vmul.f32 %v2729_v33, %v2725_v23  ;;  %v2698_v33 = vld [vmem:[%s3525_s12 + $0x8] sm:$0xff]  }
 0x7b1   :  { %v688_v36 = vpack.c.bf16 %v687_v34, %v687_v34  ;;  %v2699_v34 = vld [vmem:[%s3525_s12] sm:$0xff]  }
 0x7b3   :  { %2515 = vmatmul.mubr.msk.bf16.vlgmr.msra.gmra.mxu0 %vm347_vm3, %v688_v36 }
 0x7b4   :  { %2525 = vmatpush3.bf16.msra.mxu0 %v808_v37  ;;  %2526 = vmatprep.mubr.msk.bf16.mxu0 %vm2981_vm1, %v2980_v15 }
 0x7b5   :  { %2536 = vmatprep.subr.bf16.mxu0 %v2980_v15 }
 0x7b6   :  { %v2731_v4 = vpop.eup %2730 }
 0x7b7   :  { %v800_v38 = vmul.f32 %v2731_v4, %v2727_v25 }
 0x7b9   :  { %v801_v39 = vpack.c.bf16 %v800_v38, %v800_v38 }
 0x7bb   :  { %2527 = vmatmul.mubr.msk.bf16.vlgmr.msra.gmra.mxu0 %vm347_vm3, %v801_v39 }
 0x7bc   :  { %2537 = vmatpush3.bf16.msra.mxu0 %v3206_v28  ;;  %2538 = vmatprep.mubr.msk.bf16.mxu0 %vm2981_vm1, %v2980_v15 }
 0x7bd   :  { %2550 = vmatprep.subr.bf16.mxu0 %v2980_v15 }
 0x873   :  { %v731_v40 = vpop.f32.mrf.mxu0 }
 0x874   :  { %v737_v41 = vpack.c.bf16 %v731_v40, %v731_v40 }
 0x875   :  { %v2516_v42 = vpop.f32.mrf.mxu0 }
 0x876   :  { %2539 = vmatmul.mubr.msk.bf16.vlgmr.msra.gmra.mxu0 %vm294_vm2, %v737_v41 }
 0x877   :  { %v734_v43 = vpop.f32.mrf.mxu0  ;;  %2558 = vmatprep.mubr.msk.bf16.mxu0 %vm2981_vm1, %v2980_v15  ;;  %2551 = vmatpush3.bf16.msra.mxu0 %v2696_v29  ;;  %v2326_v29 = vld [vmem:[%s3527_s14] ss:$0 sm:$0xff] }
 0x878   :  { %2552 = vmatprep.subr.bf16.mxu0 %v2980_v15 }
 0x879   :  { %v2517_v44 = vpop.f32.mrf.mxu0 }
 0x87b   :  { %v844_v45 = vpop.f32.mrf.mxu0  ;;  %2553 = vmatpush3.bf16.msra.mxu0 %v2697_v30 }
 0x87c   :  { %v850_v46 = vpack.c.bf16 %v844_v45, %v844_v45  ;;  %2554 = vmatprep.subr.bf16.mxu0 %v2980_v15 }
 0x87d   :  { %v2528_v47 = vpop.f32.mrf.mxu0 }
 0x87e   :  { %2533 = vmatmul.mubr.msk.bf16.vlgmr.msra.gmra.mxu1 %vm294_vm2, %v850_v46 }
 0x87f   :  { %v847_v28 = vpop.f32.mrf.mxu0  ;;  %2546 = vmatprep.mubr.msk.bf16.mxu1 %vm2981_vm1, %v2980_v15  ;;  %2543 = vmatpush3.bf16.msra.mxu1 %v2694_v50 }
 0x880   :  { %2544 = vmatprep.subr.bf16.mxu1 %v2980_v15  ;;  %2555 = vmatpush3.bf16.msra.mxu0 %v2698_v33 }
 0x881   :  { %v2529_v48 = vpop.f32.mrf.mxu0  ;;  %2556 = vmatprep.subr.bf16.mxu0 %v2980_v15 }
 0x884   :  { %2557 = vmatpush3.bf16.msra.mxu0 %v2699_v34 }
 0x885   :  { %2576 = vmatprep.subr.bf16.mxu0 %v2980_v15 }
 0x936   :  { %v931_v49 = vpop.f32.mrf.mxu0 }
 0x938   :  { %v2540_v51 = vpop.f32.mrf.mxu0 }
 0x93a   :  { %v934_v55 = vpop.f32.mrf.mxu0 }
 0x93c   :  { %v2541_v56 = vpop.f32.mrf.mxu0 }
 0x93e   :  { %v888_v58 = vpop.f32.mrf.mxu1 }
 0x93f   :  { %v932_v59 = vadd.f32 %v931_v49, %v888_v58 }
 0x940   :  { %v2534_v60 = vpop.f32.mrf.mxu1 }
 0x941   :  { %v945_v63 = vadd.f32 %v3242_v12, %v932_v59 }
 0x942   :  { %v891_v0 = vpop.f32.mrf.mxu1 }
 0x943   :  { %v947_v1 = vadd.f32 %v945_v63, %v3142_v32  ;;  %v2695_v32 = vld [vmem:[%s3523_s10] sm:$0xff]  }
 0x944   :  { %v2535_v2 = vpop.f32.mrf.mxu1  ;;  %2545 = vmatpush3.bf16.msra.mxu1 %v2695_v32  ;;  %v2320_v63 = vld [vmem:[%s3526_s13] ss:$0 sm:$0xff] }
 0x945   :  { %v953_v3 = vsel %vm174_vm0, %v947_v1, 0.0  ;;  %2562 = vmatprep.subr.bf16.mxu1 %v2980_v15 }
 0x946   :  { %954 = vadd.xlane.f32.xlu0 %v953_v3 }
 0x94a   :  { %963 = vadd.xlane.f32.xlu0 %v962_v6 }
 0x9cf   :  { %v955_v7 = vpop.xlane.xlu0 %954 }
 0x9d0   :  { %v957_v8 = vmul.f32 0.03125, %v955_v7 }
 0x9d2   :  { %v959_v9 = vsub.f32 %v947_v1, %v957_v8 }
 0x9d3   :  { %v964_v52 = vpop.xlane.xlu0 %963 }
 0x9d4   :  { %v961_v10 = vmul.f32 %v959_v9, %v959_v9  ;;  %v968_v12 = vmul.f32 0.03125, %v964_v52 }
 0x9d6   :  { %v965_v11 = vsel %vm174_vm0, %v961_v10, 0.0  ;;  %v970_v13 = vadd.f32 1e-12, %v968_v12 }
 0x9d7   :  { %966 = vadd.xlane.f32.xlu1 %v965_v11 }
 0x9d8   :  { %2732 = vrsqrt.f32 %v970_v13 }
 0x9e5   :  { %v2733_v18 = vpop.eup %2732 }
 0x9e6   :  { %v974_v19 = vmul.f32 %v2733_v18, %v958_v61 }
 0x9e8   :  { %v982_v23 = vmul.f32 %v2314_v20, %v974_v19  ;;  %v2700_v19 = vld [vmem:[%s3517_s4 + $0x18] sm:$0xff]  }
 0x9ea   :  { %v990_v31 = vadd.f32 %v2315_v24, %v982_v23 }
 0xa60   :  { %v967_v14 = vpop.xlane.xlu1 %966 }
 0xa61   :  { %v969_v16 = vmul.f32 0.03125, %v967_v14 }
 0xa63   :  { %v971_v17 = vadd.f32 1e-12, %v969_v16 }
 0xa65   :  { %2734 = vrsqrt.f32 %v971_v17 }
 0xa72   :  { %v2735_v21 = vpop.eup %2734 }
 0xa73   :  { %v975_v22 = vmul.f32 %v2735_v21, %v959_v9 }
 0xa75   :  { %v983_v25 = vmul.f32 %v2314_v20, %v975_v22  ;;  %v2701_v20 = vld [vmem:[%s3517_s4 + $0x10] sm:$0xff]  }
 0xa77   :  { %v991_v26 = vadd.f32 %v2315_v24, %v983_v25 }
 0xa79   :  { %v996_v27 = vpack.c.bf16 %v991_v26, %v990_v31 }
 0xa7b   :  { %2547 = vmatmul.mubr.msk.bf16.vlgmr.msra.gmra.mxu1 %vm174_vm0, %v996_v27 }
 0xa7c   :  { %2566 = vmatprep.mubr.msk.bf16.mxu1 %vm2981_vm1, %v2980_v15  ;;  %2563 = vmatpush3.bf16.msra.mxu1 %v2700_v19 }
 0xa7d   :  { %2564 = vmatprep.subr.bf16.mxu1 %v2980_v15 }
 0xa80   :  { %2565 = vmatpush3.bf16.msra.mxu1 %v2701_v20 }
 0xa81   :  { %2570 = vmatprep.subr.bf16.mxu1 %v2980_v15 }
 0xb3b   :  { %v1053_v36 = vpop.f32.mrf.mxu1 }
 0xb3c   :  { %v1054_v37 = vadd.f32 %v2316_v35, %v1053_v36 }
 0xb3d   :  { %v2548_v4 = vpop.f32.mrf.mxu1 }
 0xb3e   :  { %v1062_v38 = vmul.f32 0.044715, %v1054_v37  ;;  %v1060_v56 = vmul.f32 0.5, %v1054_v37 }
 0xb3f   :  { %v1056_v39 = vpop.f32.mrf.mxu1 }
 0xb40   :  { %v1064_v40 = vmul.f32 %v1062_v38, %v1054_v37  ;;  %v1057_v41 = vadd.f32 %v2316_v35, %v1056_v39  ;;  %v2327_v35 = vld [vmem:[%s3528_s15] ss:$0 sm:$0xff]  ;;  %v2336_v39 = vld [vmem:[#allocation10 + $0x1] ss:$0 sm:$0xff] }
 0xb41   :  { %v2549_v42 = vpop.f32.mrf.mxu1 }
 0xb42   :  { %v1066_v43 = vmul.f32 %v1064_v40, %v1054_v37  ;;  %v1063_v44 = vmul.f32 0.044715, %v1057_v41  ;;  %v1061_v57 = vmul.f32 0.5, %v1057_v41 }
 0xb44   :  { %v1068_v45 = vadd.f32 %v1066_v43, %v1054_v37  ;;  %v1065_v46 = vmul.f32 %v1063_v44, %v1057_v41 }
 0xb46   :  { %v1070_v47 = vmul.f32 0.7978846, %v1068_v45  ;;  %v1067_v28 = vmul.f32 %v1065_v46, %v1057_v41 }
 0xb48   :  { %2736 = vtanh.f32 %v1070_v47  ;;  %v1069_v48 = vadd.f32 %v1067_v28, %v1057_v41 }
 0xb4a   :  { %v1071_v49 = vmul.f32 0.7978846, %v1069_v48 }
 0xb4c   :  { %2738 = vtanh.f32 %v1071_v49 }
 0xb55   :  { %v2737_v51 = vpop.eup %2736 }
 0xb56   :  { %v1074_v54 = vadd.f32 1.0, %v2737_v51 }
 0xb58   :  { %v1076_v59 = vmul.f32 %v1074_v54, %v1060_v56 }
 0xb59   :  { %v2739_v55 = vpop.eup %2738 }
 0xb5a   :  { %v1075_v58 = vadd.f32 1.0, %v2739_v55 }
 0xb5c   :  { %v1077_v60 = vmul.f32 %v1075_v58, %v1061_v57 }
 0xb5e   :  { %v1086_v61 = vpack.c.bf16 %v1077_v60, %v1076_v59 }
 0xb60   :  { %2559 = vmatmul.mubr.msk.bf16.vlgmr.msra.gmra.mxu0 %vm1118_vm5, %v1086_v61 }
 0xb61   :  { %2578 = vmatprep.mubr.msk.bf16.mxu0 %vm2981_vm1, %v2980_v15 }
 0xc20   :  { %v1156_v0 = vpop.f32.mrf.mxu0 }
 0xc21   :  { %v1157_v1 = vadd.f32 %v2320_v63, %v1156_v0 }
 0xc22   :  { %v2560_v2 = vpop.f32.mrf.mxu0 }
 0xc23   :  { %v1163_v3 = vadd.f32 %v1157_v1, %v990_v31 }
 0xc24   :  { %v1159_v5 = vpop.f32.mrf.mxu0 }
 0xc25   :  { %v1160_v6 = vadd.f32 %v2320_v63, %v1159_v5  ;;  %v1167_v7 = vsel %vm174_vm0, %v1163_v3, 0.0 }
 0xc26   :  { %1168 = vadd.xlane.f32.xlu0 %v1167_v7  ;;  %v2561_v8 = vpop.f32.mrf.mxu0 }
 0xc27   :  { %v1164_v9 = vadd.f32 %v1160_v6, %v991_v26 }
 0xc29   :  { %v1170_v10 = vsel %vm174_vm0, %v1164_v9, 0.0 }
 0xc2a   :  { %1171 = vadd.xlane.f32.xlu1 %v1170_v10 }
 0xcaf   :  { %v1169_v11 = vpop.xlane.xlu0 %1168 }
 0xcb0   :  { %v1173_v50 = vmul.f32 0.03125, %v1169_v11 }
 0xcb2   :  { %v1175_v32 = vsub.f32 %v1163_v3, %v1173_v50 }
 0xcb3   :  { %v1172_v52 = vpop.xlane.xlu1 %1171 }
 0xcb4   :  { %v1174_v12 = vmul.f32 0.03125, %v1172_v52  ;;  %v1177_v13 = vmul.f32 %v1175_v32, %v1175_v32 }
 0xcb6   :  { %v1176_v14 = vsub.f32 %v1164_v9, %v1174_v12  ;;  %v1179_v16 = vsel %vm174_vm0, %v1177_v13, 0.0 }
 0xcb7   :  { %1180 = vadd.xlane.f32.xlu0 %v1179_v16 }
 0xcb8   :  { %v1178_v17 = vmul.f32 %v1176_v14, %v1176_v14 }
 0xcba   :  { %v1182_v18 = vsel %vm174_vm0, %v1178_v17, 0.0 }
 0xcbb   :  { %1183 = vadd.xlane.f32.xlu1 %v1182_v18 }
 0xd40   :  { %v1181_v21 = vpop.xlane.xlu0 %1180 }
 0xd41   :  { %v1185_v22 = vmul.f32 0.03125, %v1181_v21 }
 0xd43   :  { %v1187_v23 = vadd.f32 1e-12, %v1185_v22 }
 0xd44   :  { %v1184_v24 = vpop.xlane.xlu1 %1183 }
 0xd45   :  { %2740 = vrsqrt.f32 %v1187_v23  ;;  %v1186_v25 = vmul.f32 0.03125, %v1184_v24 }
 0xd47   :  { %v1188_v31 = vadd.f32 1e-12, %v1186_v25 }
 0xd49   :  { %2742 = vrsqrt.f32 %v1188_v31  ;;  %v3383_v31 = vld [vmem:[%s3519_s6 + $0x10] sm:$0xff]  }
 0xd52   :  { %v2741_v26 = vpop.eup %2740 }
 0xd53   :  { %v1191_v27 = vmul.f32 %v2741_v26, %v1175_v32  ;;  %v2703_v26 = vld [vmem:[%s3519_s6 + $0x18] sm:$0xff]  }
 0xd55   :  { %v1199_v34 = vmul.f32 %v2326_v29, %v1191_v27 }
 0xd56   :  { %v2743_v30 = vpop.eup %2742 }
 0xd57   :  { %v1192_v33 = vmul.f32 %v2743_v30, %v1176_v14  ;;  %v3332_v37 = vadd.f32 %v2327_v35, %v1199_v34 }
 0xd59   :  { %v1200_v36 = vmul.f32 %v2326_v29, %v1192_v33 }
 0xd5b   :  { %v3334_v4 = vadd.f32 %v2327_v35, %v1200_v36 }
 0xd5d   :  { %v1219_v38 = vpack.c.bf16 %v3334_v4, %v3332_v37 }
 0xd5f   :  { %2567 = vmatmul.mubr.msk.bf16.vlgmr.msra.gmra.mxu1 %vm174_vm0, %v1219_v38 }
 0xd60   :  { %2572 = vmatprep.mubr.msk.bf16.mxu1 %vm2981_vm1, %v2980_v15 }
 0xe1f   :  { %v1277_v40 = vpop.f32.mrf.mxu1 }
 0xe20   :  { %v1278_v41 = vadd.f32 %v2336_v39, %v1277_v40 }
 0xe21   :  { %v2568_v42 = vpop.f32.mrf.mxu1 }
 0xe22   :  { %v1284_v43 = vpack.c.bf16 %v1278_v41, %v1278_v41 }
 0xe23   :  { %v1280_v44 = vpop.f32.mrf.mxu1 }
 0xe24   :  { %v1281_v45 = vadd.f32 %v2336_v39, %v1280_v44  ;;  %1399 = vrot.lane.b32.xlu1 %v1284_v43, %s2982_s30  ;;  %1286 = vrot.lane.b32.xlu0 %v1284_v43, %s2983_s21 }
 0xe25   :  { %v2569_v46 = vpop.f32.mrf.mxu1 }
 0xe26   :  { %v3359_v6 = vpack.c.bf16 %v1281_v45, %v1281_v45 }
 0xe28   :  { %1397 = vrot.lane.b32.xlu1 %v1284_v43, %s2984_s27 }
 0xe96   :  { %v1287_v47 = vpop.permute.xlu0 %1286  ;;  %v1400_v48 = vpop.permute.xlu1 %1399 }
 0xe97   :  { %v1292_v28 = vsel %vm294_vm2, %v1287_v47, 0  ;;  %v1405_v49 = vsel %vm294_vm2, %v1400_v48, 0 }
 0xe98   :  { %2571 = vmatpush3.bf16.xpose.msra.mxu1 %v1292_v28 }
 0xe99   :  { %2582 = vmatprep.subr.bf16.mxu1 %v2980_v15 }
 0xe9a   :  { %v1398_v51 = vpop.permute.xlu1 %1397 }
 0xe9f   :  { %2573 = vmatmul.mubr.msk.bf16.vlgmr.msra.gmra.mxu1 %vm294_vm2, %v1284_v43 }
 0xea0   :  { %2583 = vmatpush3.bf16.xpose.msra.mxu1 %v1405_v49  ;;  %2584 = vmatprep.mubr.msk.bf16.mxu1 %vm2981_vm1, %v2980_v15 }
 0xea1   :  { %2594 = vmatprep.subr.bf16.mxu1 %v2980_v15 }
 0xea7   :  { %2585 = vmatmul.mubr.msk.bf16.vlgmr.msra.gmra.mxu1 %vm294_vm2, %v1398_v51 }
 0xea8   :  { %2596 = vmatprep.mubr.msk.bf16.mxu1 %vm2981_vm1, %v2980_v15  ;;  %2595 = vmatpush3.bf16.msra.mxu1 %v2703_v26 }
 0xea9   :  { %2606 = vmatprep.subr.bf16.mxu1 %v2980_v15 }
 0xf5f   :  { %v1328_v54 = vpop.f32.mrf.mxu1 }
 0xf60   :  { %v1334_v55 = vmul.f32 0.25, %v1328_v54 }
 0xf61   :  { %v2574_v56 = vpop.f32.mrf.mxu1 }
 0xf62   :  { %v1335_v57 = vadd.f32 %v1334_v55, %v3173_v53 }
 0xf63   :  { %v1331_v58 = vpop.f32.mrf.mxu1 }
 0xf64   :  { %v1336_v59 = vsel %vm347_vm3, %v1335_v57, -inf }
 0xf65   :  { %1337 = vmax.xlane.f32.xlu1 %v1336_v59  ;;  %v2575_v60 = vpop.f32.mrf.mxu1 }
 0xf67   :  { %v1441_v61 = vpop.f32.mrf.mxu1 }
 0xf68   :  { %v1447_v63 = vmul.f32 0.25, %v1441_v61 }
 0xf69   :  { %v2586_v0 = vpop.f32.mrf.mxu1 }
 0xf6a   :  { %v1448_v1 = vadd.f32 %v1447_v63, %v3173_v53 }
 0xf6b   :  { %v1444_v2 = vpop.f32.mrf.mxu1 }
 0xf6c   :  { %v1449_v3 = vsel %vm347_vm3, %v1448_v1, -inf }
 0xf6d   :  { %1450 = vmax.xlane.f32.xlu0 %v1449_v3  ;;  %v2587_v5 = vpop.f32.mrf.mxu1 }
 0xf76   :  { %1348 = vrot.lane.b32.xlu1 %v1284_v43, %s2985_s22 }
 0xf7a   :  { %1610 = vrot.lane.b32.xlu1 %v3359_v6, %s2983_s21 }
 0xf7e   :  { %1723 = vrot.lane.b32.xlu1 %v3359_v6, %s2982_s30 }
 0xf82   :  { %1721 = vrot.lane.b32.xlu1 %v3359_v6, %s2984_s27 }
 0xfee   :  { %v1338_v7 = vpop.xlane.xlu1 %1337 }
 0xfef   :  { %v1339_v53 = vsub.f32 %v1335_v57, %v1338_v7 }
 0xff1   :  { %v1340_v8 = vmul.f32 1.442695, %v1339_v53 }
 0xff2   :  { %v1349_v9 = vpop.permute.xlu1 %1348 }
 0xff3   :  { %2744 = vpow2.f32 %v1340_v8  ;;  %v1354_v10 = vsel %vm365_vm4, %v1349_v9, 0  ;;  %v3415_v9 = vld [vmem:[#allocation11 + $0x1] ss:$0 sm:$0xff] }
 0xff4   :  { %2577 = vmatpush3.bf16.msra.mxu0 %v1354_v10 }
 0xff5   :  { %2588 = vmatprep.subr.bf16.mxu0 %v2980_v15 }
 0xff6   :  { %v1451_v11 = vpop.xlane.xlu0 %1450  ;;  %v1611_v35 = vpop.permute.xlu1 %1610 }
 0xff7   :  { %v1452_v50 = vsub.f32 %v1448_v1, %v1451_v11  ;;  %v1616_v40 = vsel %vm294_vm2, %v1611_v35, 0 }
 0xff9   :  { %v1453_v32 = vmul.f32 1.442695, %v1452_v50 }
 0xffb   :  { %2746 = vpow2.f32 %v1453_v32 }
0x1000   :  { %v2745_v52 = vpop.eup %2744 }
0x1001   :  { %v1342_v12 = vsel %vm347_vm3, %v2745_v52, 0.0 }
0x1002   :  { %1343 = vadd.xlane.f32.xlu0 %v1342_v12 }
0x1008   :  { %v2747_v13 = vpop.eup %2746 }
0x1009   :  { %v1455_v14 = vsel %vm347_vm3, %v2747_v13, 0.0 }
0x100a   :  { %1456 = vadd.xlane.f32.xlu0 %v1455_v14 }
0x1020   :  { %1461 = vrot.lane.b32.xlu0 %v1284_v43, %s2986_s2  ;;  %v1724_v43 = vpop.permute.xlu1 %1723 }
0x1021   :  { %v1729_v44 = vsel %vm294_vm2, %v1724_v43, 0 }
0x1024   :  { %v1722_v45 = vpop.permute.xlu1 %1721 }
0x108b   :  { %v1344_v16 = vpop.xlane.xlu0 %1343 }
0x108c   :  { %2748 = vrcp.f32 %v1344_v16 }
0x1093   :  { %v1457_v17 = vpop.xlane.xlu0 %1456 }
0x1094   :  { %2750 = vrcp.f32 %v1457_v17 }
0x1097   :  { %v1462_v20 = vpop.permute.xlu0 %1461 }
0x1098   :  { %v1467_v22 = vsel %vm365_vm4, %v1462_v20, 0 }
0x1099   :  { %v2749_v18 = vpop.eup %2748 }
0x109a   :  { %v1346_v19 = vmul.f32 %v2749_v18, %v2745_v52 }
0x109c   :  { %v1347_v21 = vpack.c.bf16 %v1346_v19, %v1346_v19 }
0x109e   :  { %2579 = vmatmul.mubr.msk.bf16.vlgmr.msra.gmra.mxu0 %vm347_vm3, %v1347_v21 }
0x109f   :  { %2589 = vmatpush3.bf16.msra.mxu0 %v1467_v22  ;;  %2590 = vmatprep.mubr.msk.bf16.mxu0 %vm2981_vm1, %v2980_v15 }
0x10a0   :  { %2600 = vmatprep.subr.bf16.mxu0 %v2980_v15 }
0x10a1   :  { %v2751_v23 = vpop.eup %2750 }
0x10a2   :  { %v1459_v24 = vmul.f32 %v2751_v23, %v2747_v13 }
0x10a4   :  { %v1460_v25 = vpack.c.bf16 %v1459_v24, %v1459_v24 }
0x10a6   :  { %2591 = vmatmul.mubr.msk.bf16.vlgmr.msra.gmra.mxu0 %vm347_vm3, %v1460_v25 }
0x10a7   :  { %2602 = vmatprep.mubr.msk.bf16.mxu0 %vm2981_vm1, %v2980_v15  ;;  %2601 = vmatpush3.bf16.msra.mxu0 %v3383_v31 }
0x10a8   :  { %2612 = vmatprep.subr.bf16.mxu0 %v2980_v15 }
0x115e   :  { %v1390_v27 = vpop.f32.mrf.mxu0 }
0x115f   :  { %v1396_v29 = vpack.c.bf16 %v1390_v27, %v1390_v27 }
0x1160   :  { %v2580_v30 = vpop.f32.mrf.mxu0 }
0x1161   :  { %2603 = vmatmul.mubr.msk.bf16.vlgmr.msra.gmra.mxu0 %vm294_vm2, %v1396_v29 }
0x1162   :  { %v1393_v33 = vpop.f32.mrf.mxu0  ;;  %2614 = vmatprep.mubr.msk.bf16.mxu0 %vm2981_vm1, %v2980_v15 }
0x1164   :  { %v2581_v34 = vpop.f32.mrf.mxu0 }
0x1166   :  { %v1503_v36 = vpop.f32.mrf.mxu0 }
0x1167   :  { %v1509_v38 = vpack.c.bf16 %v1503_v36, %v1503_v36 }
0x1168   :  { %v2592_v39 = vpop.f32.mrf.mxu0 }
0x1169   :  { %2597 = vmatmul.mubr.msk.bf16.vlgmr.msra.gmra.mxu1 %vm294_vm2, %v1509_v38 }
0x116a   :  { %2607 = vmatpush3.bf16.xpose.msra.mxu1 %v1616_v40  ;;  %v1506_v41 = vpop.f32.mrf.mxu0  ;;  %2608 = vmatprep.mubr.msk.bf16.mxu1 %vm2981_vm1, %v2980_v15 }
0x116b   :  { %2618 = vmatprep.subr.bf16.mxu1 %v2980_v15 }
0x116c   :  { %v2593_v42 = vpop.f32.mrf.mxu0 }
0x1171   :  { %2609 = vmatmul.mubr.msk.bf16.vlgmr.msra.gmra.mxu1 %vm294_vm2, %v3359_v6 }
0x1172   :  { %2619 = vmatpush3.bf16.xpose.msra.mxu1 %v1729_v44  ;;  %2620 = vmatprep.mubr.msk.bf16.mxu1 %vm2981_vm1, %v2980_v15 }
0x1173   :  { %2630 = vmatprep.subr.bf16.mxu1 %v2980_v15 }
0x1179   :  { %2621 = vmatmul.mubr.msk.bf16.vlgmr.msra.gmra.mxu1 %vm294_vm2, %v1722_v45 }
0x117a   :  { %2631 = vmatpush3.bf16.msra.mxu1 %v2703_v26  ;;  %2632 = vmatprep.mubr.msk.bf16.mxu1 %vm2981_vm1, %v2980_v15 }
0x117b   :  { %2642 = vmatprep.subr.bf16.mxu1 %v2980_v15 }
0x1221   :  { %v1602_v46 = vpop.f32.mrf.mxu0 }
0x1223   :  { %v2604_v47 = vpop.f32.mrf.mxu0 }
0x1225   :  { %v1605_v28 = vpop.f32.mrf.mxu0 }
0x1227   :  { %v2605_v48 = vpop.f32.mrf.mxu0 }
0x1229   :  { %v1553_v49 = vpop.f32.mrf.mxu1 }
0x122a   :  { %v1603_v51 = vadd.f32 %v1602_v46, %v1553_v49 }
0x122b   :  { %v2598_v54 = vpop.f32.mrf.mxu1 }
0x122c   :  { %v1928_v10 = vadd.f32 %v3415_v9, %v1603_v51 }
0x122d   :  { %v1556_v55 = vpop.f32.mrf.mxu1 }
0x122e   :  { %v3419_v11 = vadd.f32 %v1928_v10, %v3332_v37 }
0x122f   :  { %v2599_v56 = vpop.f32.mrf.mxu1 }
0x1230   :  { %v1936_v50 = vsel %vm174_vm0, %v3419_v11, 0.0 }
0x1231   :  { %v1652_v57 = vpop.f32.mrf.mxu1 }
0x1232   :  { %v1658_v58 = vmul.f32 0.25, %v1652_v57 }
0x1233   :  { %v2610_v59 = vpop.f32.mrf.mxu1 }
0x1234   :  { %v1659_v60 = vadd.f32 %v1658_v58, %v3234_v62 }
0x1235   :  { %v1655_v61 = vpop.f32.mrf.mxu1 }
0x1236   :  { %v1660_v63 = vsel %vm347_vm3, %v1659_v60, -inf }
0x1237   :  { %1661 = vmax.xlane.f32.xlu0 %v1660_v63  ;;  %v2611_v0 = vpop.f32.mrf.mxu1 }
0x1239   :  { %v1765_v1 = vpop.f32.mrf.mxu1 }
0x123a   :  { %v1771_v2 = vmul.f32 0.25, %v1765_v1 }
0x123b   :  { %v2622_v3 = vpop.f32.mrf.mxu1 }
0x123c   :  { %v1772_v5 = vadd.f32 %v1771_v2, %v3234_v62 }
0x123d   :  { %v1768_v7 = vpop.f32.mrf.mxu1 }
0x123e   :  { %v1773_v53 = vsel %vm347_vm3, %v1772_v5, -inf }
0x123f   :  { %1774 = vmax.xlane.f32.xlu1 %v1773_v53  ;;  %v2623_v8 = vpop.f32.mrf.mxu1 }
0x1250   :  { %1785 = vrot.lane.b32.xlu1 %v3359_v6, %s2986_s2 }
0x1274   :  { %1937 = vadd.xlane.f32.xlu1 %v1936_v50 }
0x12c0   :  { %v1662_v62 = vpop.xlane.xlu0 %1661 }
0x12c1   :  { %v1663_v32 = vsub.f32 %v1659_v60, %v1662_v62 }
0x12c3   :  { %v1664_v52 = vmul.f32 1.442695, %v1663_v32  ;;  %v2355_v32 = vld [vmem:[#allocation13 + $0x1] ss:$0 sm:$0xff] }
0x12c5   :  { %2752 = vpow2.f32 %v1664_v52 }
0x12c8   :  { %v1775_v12 = vpop.xlane.xlu1 %1774 }
0x12c9   :  { %v1776_v13 = vsub.f32 %v1772_v5, %v1775_v12  ;;  %v2704_v5 = vld [vmem:[%s3523_s10 + $0x18] sm:$0xff]  }
0x12cb   :  { %v1777_v14 = vmul.f32 1.442695, %v1776_v13 }
0x12cc   :  { %v1786_v25 = vpop.permute.xlu1 %1785 }
0x12cd   :  { %2754 = vpow2.f32 %v1777_v14  ;;  %v1791_v27 = vsel %vm365_vm4, %v1786_v25, 0  ;;  %v2356_v14 = vld [vmem:[#allocation14 + $0x1] ss:$0 sm:$0xff] }
0x12d2   :  { %v2753_v16 = vpop.eup %2752 }
0x12d3   :  { %v1666_v17 = vsel %vm347_vm3, %v2753_v16, 0.0 }
0x12d4   :  { %1667 = vadd.xlane.f32.xlu0 %v1666_v17 }
0x12da   :  { %v2755_v18 = vpop.eup %2754 }
0x12db   :  { %v1779_v37 = vsel %vm347_vm3, %v2755_v18, 0.0 }
0x12dc   :  { %1780 = vadd.xlane.f32.xlu0 %v1779_v37 }
0x12f2   :  { %1672 = vrot.lane.b32.xlu0 %v3359_v6, %s2985_s22 }
0x12fd   :  { %v1938_v45 = vpop.xlane.xlu1 %1937 }
0x12fe   :  { %v1942_v28 = vmul.f32 0.03125, %v1938_v45 }
0x1300   :  { %v1944_v54 = vsub.f32 %v3419_v11, %v1942_v28 }
0x1302   :  { %v1946_v60 = vmul.f32 %v1944_v54, %v1944_v54 }
0x1304   :  { %v1948_v61 = vsel %vm174_vm0, %v1946_v60, 0.0 }
0x135d   :  { %v1668_v19 = vpop.xlane.xlu0 %1667 }
0x135e   :  { %2756 = vrcp.f32 %v1668_v19  ;;  %v2706_v19 = vld [vmem:[%s3525_s12 + $0x38] sm:$0xff]  }
0x1365   :  { %v1781_v20 = vpop.xlane.xlu0 %1780 }
0x1366   :  { %2758 = vrcp.f32 %v1781_v20  ;;  %v2707_v20 = vld [vmem:[%s3525_s12 + $0x30] sm:$0xff]  }
0x1369   :  { %v1673_v21 = vpop.permute.xlu0 %1672 }
0x136a   :  { %v1678_v22 = vsel %vm365_vm4, %v1673_v21, 0  ;;  %v2708_v21 = vld [vmem:[%s3525_s12 + $0x28] sm:$0xff]  }
0x136b   :  { %v2757_v23 = vpop.eup %2756  ;;  %2613 = vmatpush3.bf16.msra.mxu0 %v1678_v22  ;;  %v2709_v22 = vld [vmem:[%s3525_s12 + $0x20] sm:$0xff]  }
0x136c   :  { %2624 = vmatprep.subr.bf16.mxu0 %v2980_v15  ;;  %v1670_v24 = vmul.f32 %v2757_v23, %v2753_v16  ;;  %v2362_v23 = vld [vmem:[%s3524_s11 + $0x1] ss:$0 sm:$0xff] }
0x136e   :  { %v1671_v26 = vpack.c.bf16 %v1670_v24, %v1670_v24 }
0x1370   :  { %2615 = vmatmul.mubr.msk.bf16.vlgmr.msra.gmra.mxu0 %vm347_vm3, %v1671_v26 }
0x1371   :  { %2625 = vmatpush3.bf16.msra.mxu0 %v1791_v27  ;;  %2626 = vmatprep.mubr.msk.bf16.mxu0 %vm2981_vm1, %v2980_v15 }
0x1372   :  { %2636 = vmatprep.subr.bf16.mxu0 %v2980_v15 }
0x1373   :  { %v2759_v6 = vpop.eup %2758 }
0x1374   :  { %v1783_v29 = vmul.f32 %v2759_v6, %v2755_v18 }
0x1376   :  { %v1784_v30 = vpack.c.bf16 %v1783_v29, %v1783_v29 }
0x1378   :  { %2627 = vmatmul.mubr.msk.bf16.vlgmr.msra.gmra.mxu0 %vm347_vm3, %v1784_v30 }
0x1379   :  { %2637 = vmatpush3.bf16.msra.mxu0 %v3383_v31  ;;  %2638 = vmatprep.mubr.msk.bf16.mxu0 %vm2981_vm1, %v2980_v15 }
0x137a   :  { %2650 = vmatprep.subr.bf16.mxu0 %v2980_v15 }
0x1430   :  { %v1714_v33 = vpop.f32.mrf.mxu0 }
0x1431   :  { %v1720_v34 = vpack.c.bf16 %v1714_v33, %v1714_v33 }
0x1432   :  { %v2616_v35 = vpop.f32.mrf.mxu0 }
0x1433   :  { %2639 = vmatmul.mubr.msk.bf16.vlgmr.msra.gmra.mxu0 %vm294_vm2, %v1720_v34 }
0x1434   :  { %v1717_v36 = vpop.f32.mrf.mxu0  ;;  %2658 = vmatprep.mubr.msk.bf16.mxu0 %vm2981_vm1, %v2980_v15  ;;  %2651 = vmatpush3.bf16.msra.mxu0 %v2706_v19 }
0x1435   :  { %2652 = vmatprep.subr.bf16.mxu0 %v2980_v15 }
0x1436   :  { %v2617_v38 = vpop.f32.mrf.mxu0 }
0x1438   :  { %v1827_v39 = vpop.f32.mrf.mxu0  ;;  %2653 = vmatpush3.bf16.msra.mxu0 %v2707_v20 }
0x1439   :  { %v1833_v40 = vpack.c.bf16 %v1827_v39, %v1827_v39  ;;  %2654 = vmatprep.subr.bf16.mxu0 %v2980_v15 }
0x143a   :  { %v2628_v41 = vpop.f32.mrf.mxu0 }
0x143b   :  { %2633 = vmatmul.mubr.msk.bf16.vlgmr.msra.gmra.mxu1 %vm294_vm2, %v1833_v40 }
0x143c   :  { %v1830_v31 = vpop.f32.mrf.mxu0  ;;  %2646 = vmatprep.mubr.msk.bf16.mxu1 %vm2981_vm1, %v2980_v15  ;;  %2643 = vmatpush3.bf16.msra.mxu1 %v2704_v5 }
0x143d   :  { %2644 = vmatprep.subr.bf16.mxu1 %v2980_v15  ;;  %2655 = vmatpush3.bf16.msra.mxu0 %v2708_v21 }
0x143e   :  { %v2629_v42 = vpop.f32.mrf.mxu0  ;;  %2656 = vmatprep.subr.bf16.mxu0 %v2980_v15 }
0x1441   :  { %2657 = vmatpush3.bf16.msra.mxu0 %v2709_v22 }
0x14f3   :  { %v1914_v43 = vpop.f32.mrf.mxu0 }
0x14f5   :  { %v2640_v44 = vpop.f32.mrf.mxu0 }
0x14f7   :  { %v1917_v46 = vpop.f32.mrf.mxu0 }
0x14f9   :  { %v2641_v47 = vpop.f32.mrf.mxu0 }
0x14fb   :  { %v1871_v48 = vpop.f32.mrf.mxu1 }
0x14fc   :  { %v1915_v49 = vadd.f32 %v1914_v43, %v1871_v48 }
0x14fd   :  { %v2634_v51 = vpop.f32.mrf.mxu1 }
0x14fe   :  { %v1929_v55 = vadd.f32 %v3415_v9, %v1915_v49  ;;  %v2375_v51 = vld [vmem:[%s3526_s13 + $0x1] ss:$0 sm:$0xff] }
0x14ff   :  { %v1874_v56 = vpop.f32.mrf.mxu1 }
0x1500   :  { %v1931_v57 = vadd.f32 %v1929_v55, %v3334_v4  ;;  %v2705_v4 = vld [vmem:[%s3523_s10 + $0x10] sm:$0xff]  }
0x1501   :  { %v2635_v58 = vpop.f32.mrf.mxu1  ;;  %2645 = vmatpush3.bf16.msra.mxu1 %v2705_v4 }
0x1502   :  { %v1939_v59 = vsel %vm174_vm0, %v1931_v57, 0.0  ;;  %2662 = vmatprep.subr.bf16.mxu1 %v2980_v15 }
0x1503   :  { %1940 = vadd.xlane.f32.xlu0 %v1939_v59 }
0x1507   :  { %1949 = vadd.xlane.f32.xlu0 %v1948_v61 }
0x158c   :  { %v1941_v63 = vpop.xlane.xlu0 %1940 }
0x158d   :  { %v1943_v0 = vmul.f32 0.03125, %v1941_v63 }
0x158f   :  { %v1945_v1 = vsub.f32 %v1931_v57, %v1943_v0 }
0x1590   :  { %v1950_v7 = vpop.xlane.xlu0 %1949 }
0x1591   :  { %v1947_v2 = vmul.f32 %v1945_v1, %v1945_v1  ;;  %v1954_v53 = vmul.f32 0.03125, %v1950_v7 }
0x1593   :  { %v1951_v3 = vsel %vm174_vm0, %v1947_v2, 0.0  ;;  %v1956_v8 = vadd.f32 1e-12, %v1954_v53 }
0x1594   :  { %1952 = vadd.xlane.f32.xlu1 %v1951_v3 }
0x1595   :  { %2760 = vrsqrt.f32 %v1956_v8 }
0x15a2   :  { %v2761_v50 = vpop.eup %2760 }
0x15a3   :  { %v1960_v62 = vmul.f32 %v2761_v50, %v1944_v54  ;;  %v2711_v50 = vld [vmem:[%s3529_s16] sm:$0xff]  }
0x15a5   :  { %v1968_v13 = vmul.f32 %v2355_v32, %v1960_v62 }
0x15a7   :  { %v1976_v17 = vadd.f32 %v2356_v14, %v1968_v13 }
0x161d   :  { %v1953_v9 = vpop.xlane.xlu1 %1952 }
0x161e   :  { %v1955_v10 = vmul.f32 0.03125, %v1953_v9 }
0x1620   :  { %v1957_v11 = vadd.f32 1e-12, %v1955_v10 }
0x1622   :  { %2762 = vrsqrt.f32 %v1957_v11  ;;  %v2710_v11 = vld [vmem:[%s3529_s16 + $0x8] sm:$0xff]  }
0x162f   :  { %v2763_v52 = vpop.eup %2762 }
0x1630   :  { %v1961_v12 = vmul.f32 %v2763_v52, %v1945_v1 }
0x1632   :  { %v1969_v16 = vmul.f32 %v2355_v32, %v1961_v12 }
0x1634   :  { %v1977_v18 = vadd.f32 %v2356_v14, %v1969_v16 }
0x1636   :  { %v1983_v37 = vpack.c.bf16 %v1977_v18, %v1976_v17 }
0x1638   :  { %2647 = vmatmul.mubr.msk.bf16.vlgmr.msra.gmra.mxu1 %vm174_vm0, %v1983_v37 }
0x1639   :  { %2666 = vmatprep.mubr.msk.bf16.mxu1 %vm2981_vm1, %v2980_v15  ;;  %2663 = vmatpush3.bf16.msra.mxu1 %v2710_v11 }
0x163a   :  { %2664 = vmatprep.subr.bf16.mxu1 %v2980_v15  ;;  %v2384_v15 = vld [vmem:[%s3528_s15 + $0x1] ss:$0 sm:$0xff] }
0x163d   :  { %2665 = vmatpush3.bf16.msra.mxu1 %v2711_v50 }
0x16f8   :  { %v2041_v24 = vpop.f32.mrf.mxu1 }
0x16f9   :  { %v2042_v25 = vadd.f32 %v2362_v23, %v2041_v24 }
0x16fa   :  { %v2648_v26 = vpop.f32.mrf.mxu1 }
0x16fb   :  { %v2050_v27 = vmul.f32 0.044715, %v2042_v25  ;;  %v2048_v45 = vmul.f32 0.5, %v2042_v25 }
0x16fc   :  { %v2044_v6 = vpop.f32.mrf.mxu1 }
0x16fd   :  { %v2052_v29 = vmul.f32 %v2050_v27, %v2042_v25  ;;  %v2045_v30 = vadd.f32 %v2362_v23, %v2044_v6 }
0x16fe   :  { %v2649_v33 = vpop.f32.mrf.mxu1 }
0x16ff   :  { %v2054_v34 = vmul.f32 %v2052_v29, %v2042_v25  ;;  %v2051_v35 = vmul.f32 0.044715, %v2045_v30  ;;  %v2049_v46 = vmul.f32 0.5, %v2045_v30 }
0x1701   :  { %v2056_v36 = vadd.f32 %v2054_v34, %v2042_v25  ;;  %v2053_v38 = vmul.f32 %v2051_v35, %v2045_v30  ;;  %v2385_v25 = vld [vmem:[%s3530_s17] ss:$0 sm:$0xff] }
0x1703   :  { %v2058_v39 = vmul.f32 0.7978846, %v2056_v36  ;;  %v2055_v40 = vmul.f32 %v2053_v38, %v2045_v30 }
0x1705   :  { %2764 = vtanh.f32 %v2058_v39  ;;  %v2057_v41 = vadd.f32 %v2055_v40, %v2045_v30 }
0x1707   :  { %v2059_v31 = vmul.f32 0.7978846, %v2057_v41 }
0x1709   :  { %2766 = vtanh.f32 %v2059_v31 }
0x1712   :  { %v2765_v42 = vpop.eup %2764 }
0x1713   :  { %v2062_v43 = vadd.f32 1.0, %v2765_v42 }
0x1715   :  { %v2064_v28 = vmul.f32 %v2062_v43, %v2048_v45 }
0x1716   :  { %v2767_v44 = vpop.eup %2766 }
0x1717   :  { %v2063_v47 = vadd.f32 1.0, %v2767_v44 }
0x1719   :  { %v2065_v48 = vmul.f32 %v2063_v47, %v2049_v46 }
0x171b   :  { %v2075_v49 = vpack.c.bf16 %v2065_v48, %v2064_v28 }
0x171d   :  { %2659 = vmatmul.mubr.msk.bf16.vlgmr.msra.gmra.mxu0 %vm1118_vm5, %v2075_v49 }
0x17dd   :  { %v2145_v54 = vpop.f32.mrf.mxu0 }
0x17de   :  { %v2146_v55 = vadd.f32 %v2375_v51, %v2145_v54 }
0x17df   :  { %v2660_v56 = vpop.f32.mrf.mxu0 }
0x17e0   :  { %v2152_v57 = vadd.f32 %v2146_v55, %v1976_v17 }
0x17e1   :  { %v2148_v58 = vpop.f32.mrf.mxu0 }
0x17e2   :  { %v2149_v59 = vadd.f32 %v2375_v51, %v2148_v58  ;;  %v2158_v60 = vsel %vm174_vm0, %v2152_v57, 0.0 }
0x17e3   :  { %2159 = vadd.xlane.f32.xlu0 %v2158_v60  ;;  %v2661_v61 = vpop.f32.mrf.mxu0 }
0x17e4   :  { %v2153_v63 = vadd.f32 %v2149_v59, %v1977_v18  ;;  %v2383_v18 = vld [vmem:[%s3527_s14 + $0x1] ss:$0 sm:$0xff]  ;;  %s2987_s14 = smov [#allocation16]  }
0x17e5   :  { %s2277_s15 = sshll.u32 %s2987_s14, 4  ;;  %s2278_s15 = int_to_ptr.vmem [resolvable:$true] %s2277_s15 }
0x17e6   :  { %v2161_v0 = vsel %vm174_vm0, %v2153_v63, 0.0  ;;  %s2936_s22 = scalar_lea.vmem %s2278_s15, 256  ;;  %p2941_p13 = scmp.lt.s32.totalorder %s2278_s15, %s2278_s15 }
0x17e7   :  { %2162 = vadd.xlane.f32.xlu1 %v2161_v0  ;;  %p2937_p12 = scmp.ne.s32.totalorder %s2278_s15, %s2936_s22  ;;  %p2942_p0 = scmp.lt.s32.totalorder %s2936_s22, %s2936_s22 }
0x17e9   :  { %p2943_p1 = por %p2942_p0, %p2941_p13 }
0x17eb   :  { %p2944_p2 = pnand %p2943_p1, %p2937_p12 }
0x186c   :  { %v2160_v1 = vpop.xlane.xlu0 %2159 }
0x186d   :  { %v2164_v2 = vmul.f32 0.03125, %v2160_v1 }
0x186f   :  { %v2166_v3 = vsub.f32 %v2152_v57, %v2164_v2 }
0x1870   :  { %v2163_v5 = vpop.xlane.xlu1 %2162 }
0x1871   :  { %v2165_v4 = vmul.f32 0.03125, %v2163_v5  ;;  %v2168_v7 = vmul.f32 %v2166_v3, %v2166_v3 }
0x1873   :  { %v2167_v53 = vsub.f32 %v2153_v63, %v2165_v4  ;;  %v2170_v8 = vsel %vm174_vm0, %v2168_v7, 0.0 }
0x1874   :  { %2171 = vadd.xlane.f32.xlu0 %v2170_v8 }
0x1875   :  { %v2169_v9 = vmul.f32 %v2167_v53, %v2167_v53 }
0x1877   :  { %v2173_v10 = vsel %vm174_vm0, %v2169_v9, 0.0 }
0x1878   :  { %2174 = vadd.xlane.f32.xlu1 %v2173_v10 }
0x18fd   :  { %v2172_v62 = vpop.xlane.xlu0 %2171 }
0x18fe   :  { %v2176_v32 = vmul.f32 0.03125, %v2172_v62 }
0x1900   :  { %v2178_v52 = vadd.f32 1e-12, %v2176_v32 }
0x1901   :  { %v2175_v12 = vpop.xlane.xlu1 %2174 }
0x1902   :  { %2768 = vrsqrt.f32 %v2178_v52  ;;  %v2177_v13 = vmul.f32 0.03125, %v2175_v12 }
0x1904   :  { %v2179_v14 = vadd.f32 1e-12, %v2177_v13 }
0x1906   :  { %2770 = vrsqrt.f32 %v2179_v14 }
0x190f   :  { %v2769_v16 = vpop.eup %2768 }
0x1910   :  { %v2182_v17 = vmul.f32 %v2769_v16, %v2166_v3 }
0x1912   :  { %v2190_v20 = vmul.f32 %v2383_v18, %v2182_v17 }
0x1913   :  { %v2771_v37 = vpop.eup %2770 }
0x1914   :  { %v2183_v19 = vmul.f32 %v2771_v37, %v2167_v53  ;;  %v2198_v22 = vadd.f32 %v2384_v15, %v2190_v20 }
0x1916   :  { %v2191_v21 = vmul.f32 %v2383_v18, %v2183_v19 }
0x1918   :  { %v2199_v23 = vadd.f32 %v2384_v15, %v2191_v21 }
0x191a   :  { %v2204_v24 = vpack.c.bf16 %v2199_v23, %v2198_v22 }
0x191c   :  { %2667 = vmatmul.mubr.msk.bf16.vlgmr.msra.gmra.mxu1 %vm174_vm0, %v2204_v24 }
0x19dc   :  { %v2261_v26 = vpop.f32.mrf.mxu1 }
0x19dd   :  { %v2262_v27 = vadd.f32 %v2385_v25, %v2261_v26 }
0x19de   :  { %v2668_v6 = vpop.f32.mrf.mxu1 }
0x19df   :  { %2772 = vtanh.f32 %v2262_v27 }
0x19e0   :  { %v2264_v29 = vpop.f32.mrf.mxu1 }
0x19e1   :  { %v2265_v30 = vadd.f32 %v2385_v25, %v2264_v29 }
0x19e2   :  { %v2669_v33 = vpop.f32.mrf.mxu1 }
0x19e3   :  { %2774 = vtanh.f32 %v2265_v30 }
0x19ec   :  { %v2773_v34 = vpop.eup %2772 }
0x19ed   :  { %2270 = vst.msk [vmem:[#allocation16] sm:$0xff] %vm174_vm0, %v2773_v34 }
0x19f0   :  { %v2775_v35 = vpop.eup %2774 }
0x19f1   :  { %2271 = vst.msk [vmem:[#allocation16 + $0x8] sm:$0xff] %vm174_vm0, %v2775_v35 }
0x19f2   :  { %2947 = shalt.err (!%p2944_p2)
}
0x19f3   :  { %2283 = dma.vmem_to_hbm [thread:$0]  %s2278_s15, 256, %s3531_s18, [#allocation4], %s2974_s1, %s2974_s1, %s2975_s20  }
0x19f4   :  { %2966 = dma.done.wait [#allocation4], 256  }
0x19f5   :  { %2967 = vsyncadd [#allocation4], 4294967040 }
0x19f6   :  { %2287 = vsyncpa [#allocation3], 1 }
0x19f7   :  { %2288 = vsyncpa [#allocation6], 1 }
0x19f8   :  { %2289 = vsyncpa [#allocation9], 1 }
0x19f9   :  { %2290 = vsyncpa [#allocation12], 1 }
0x19fa   :  { %2291 = vsyncpa [#allocation15], 1 }
0x19fb   :  { %2292 = vsyncpa [#allocation4], 1 }

</bundles_post_ra>
